<compile_context>
chip_gen: v7x
topology: tpu7x:2x2x1
jax: 0.10.0
libtpu: 0.0.40
codegen_flags: <defaults>
</compile_context>

<pallas_src>
import functools

import jax
import jax.numpy as jnp
from jax import lax
from jax.experimental import pallas as pl
from jax.experimental.pallas import tpu as pltpu

EPS = 1e-5                      # nn.BatchNorm2d default eps
COMPUTE_DTYPE = jnp.bfloat16    # MXU-native activation/weight dtype


# ---------------------------------------------------------------------------
# VMEM sizing helpers
# ---------------------------------------------------------------------------
@functools.lru_cache(maxsize=None)
def _vmem_limit_bytes():
    """Scoped VMEM limit: ~3/4 of physical (v5e/v6e ~96 MiB, v7x ~48 MiB)."""
    try:
        phys = int(pltpu.get_tpu_info().vmem_capacity_bytes)
    except Exception:  # no TPU info available -> conservative default
        phys = 64 * 1024 * 1024
    return min(phys * 3 // 4, 100 * 1024 * 1024)


def _rup(v, m):
    return ((v + m - 1) // m) * m


def _blk_bytes(lead, sub, lane, itemsize):
    """Rough VMEM footprint of a (..., sub, lane) block after (8/16,128) tiling."""
    sub_g = 8 if itemsize >= 4 else 16
    return lead * _rup(sub, sub_g) * _rup(lane, 128) * itemsize


def _conv_step_vmem_bytes(t, w, cin, cout):
    bf, f32 = 2, 4
    k3 = 3 * cin
    pipelined = (2 * _blk_bytes(t, w, cin, bf)        # main input tile (x2 bufs)
                 + 4 * _blk_bytes(1, w, cin, bf)      # two 1-row halos (x2 bufs)
                 + 2 * _blk_bytes(3, k3, cout, bf)    # resident weights
                 + 2 * _blk_bytes(t, w, cout, bf))    # y output tile (x2 bufs)
    scratch = (_blk_bytes(t + 2, w, cin, bf)          # activated rows
               + _blk_bytes(t + 2, w + 2, cin, bf)    # W-padded rows
               + _blk_bytes(t + 2, w, k3, bf)         # kw-folded operand
               + _blk_bytes(1, t * w, k3, bf)         # one matmul band
               + _blk_bytes(1, t * w, cout, f32)      # f32 accumulator
               + _blk_bytes(t, w, cin, f32))          # activation temp
    return pipelined + 2 * scratch                    # fudge for relayout copies


def _pick_tile_h(h, w, cin, cmid, cout):
    """Largest row-tile (divisor of H) that fits the per-step VMEM budget."""
    budget = _vmem_limit_bytes() // 2
    ci, co = max(cin, cmid), max(cmid, cout)
    for t in range(h, 0, -1):
        if h % t == 0 and _conv_step_vmem_bytes(t, w, ci, co) <= budget:
            return t
    return 1


# ---------------------------------------------------------------------------
# Kernel 1/2: 3x3 conv on a row tile (+ optional fused input BN+ReLU)
#             + per-tile BatchNorm statistics
# ---------------------------------------------------------------------------
def _conv3x3_bn_stats_kernel(*refs, fuse_act):
    """One (n, h_tile) grid step.

    refs (fuse_act=False): xm, xt, xb, w, y, sum, sqsum
    refs (fuse_act=True) : xm, xt, xb, scale, shift, w, y, sum, sqsum

      xm : (1, T, W, Cin)   rows [j*T, j*T+T) of the (unpadded) input
      xt : (1, 1, W, Cin)   row j*T-1 (clamped; zeroed in-kernel when j == 0)
      xb : (1, 1, W, Cin)   row j*T+T (clamped; zeroed when j == num_h-1)
      scale/shift : (1, 1, Cin) f32 folded BN1 scale/shift (fused pass only)
      w  : (3, 3*Cin, Cout) weights with (kw, ci) folded into the contraction
      y  : (1, T, W, Cout)  pre-BN conv output (bf16)
      sum/sqsum : (1, 1, 1, Cout) per-tile channel sums of the bf16 y values
    """
    if fuse_act:
        (xm_ref, xt_ref, xb_ref, scale_ref, shift_ref, w_ref,
         y_ref, sum_ref, sq_ref) = refs
    else:
        xm_ref, xt_ref, xb_ref, w_ref, y_ref, sum_ref, sq_ref = refs
        scale_ref = shift_ref = None

    j = pl.program_id(1)
    num_h = pl.num_programs(1)

    xm = xm_ref[0]                                    # (T, W, Cin) bf16
    xt = xt_ref[0]                                    # (1, W, Cin)
    xb = xb_ref[0]                                    # (1, W, Cin)
    t, w_img, cin = xm.shape
    cout = y_ref.shape[-1]

    if fuse_act:
        scale = scale_ref[...]                        # (1, 1, Cin) f32
        shift = shift_ref[...]

        def act(v):                                   # fused BN1 + ReLU
            a = v.astype(jnp.float32) * scale + shift
            return jnp.maximum(a, 0.0).astype(v.dtype)
    else:
        def act(v):
            return v

    # Activated rows; out-of-image halo rows are forced to zero (conv padding).
    a_mid = act(xm)
    a_top = act(xt) * (j > 0).astype(xm.dtype)
    a_bot = act(xb) * (j < num_h - 1).astype(xm.dtype)
    a_rows = jnp.concatenate([a_top, a_mid, a_bot], axis=0)      # (T+2, W, Cin)

    # Zero W-border (conv padding) and fold the 3 kw taps into the channel dim.
    zcol = jnp.zeros((t + 2, 1, cin), a_rows.dtype)
    a_pad = jnp.concatenate([zcol, a_rows, zcol], axis=1)        # (T+2, W+2, Cin)
    af = jnp.concatenate([a_pad[:, 0:w_img, :],
                          a_pad[:, 1:w_img + 1, :],
                          a_pad[:, 2:w_img + 2, :]], axis=-1)    # (T+2, W, 3Cin)

    # 3 MXU matmuls (one per kh), K = 3*Cin, f32 accumulation.
    acc = jnp.zeros((t * w_img, cout), jnp.float32)
    for kh in range(3):
        band = af[kh:kh + t].reshape(t * w_img, 3 * cin)
        acc = acc + jnp.dot(band, w_ref[kh],
                            preferred_element_type=jnp.float32)

    # Pre-BN activations (re-read by the next pass) ...
    y_bf = acc.astype(y_ref.dtype)
    y_ref[...] = y_bf.reshape(1, t, w_img, cout)

    # ... and per-tile batch statistics computed from the *same* bf16-rounded
    # values the scale/shift will later be applied to.
    yf = y_bf.astype(jnp.float32)
    sum_ref[...] = jnp.sum(yf, axis=0, keepdims=True).reshape(1, 1, 1, cout)
    sq_ref[...] = jnp.sum(yf * yf, axis=0, keepdims=True).reshape(1, 1, 1, cout)


def _conv3x3_bn_stats(x_nhwc, w_mat, scale, shift, tile_h):
    """3x3 conv (pad=1, no bias) over row tiles, optionally fusing an input
    BN+ReLU; returns pre-BN output (bf16) and per-tile channel sum/sumsq."""
    n, h, w, cin = x_nhwc.shape
    cout = w_mat.shape[-1]
    t = tile_h
    assert h % t == 0, (h, t)
    num_h = h // t
    fuse_act = scale is not None

    kernel = functools.partial(_conv3x3_bn_stats_kernel, fuse_act=fuse_act)

    x_main_spec = pl.BlockSpec((1, t, w, cin), lambda i, j: (i, j, 0, 0))
    x_top_spec = pl.BlockSpec(
        (1, 1, w, cin), lambda i, j: (i, jnp.maximum(j * t - 1, 0), 0, 0))
    x_bot_spec = pl.BlockSpec(
        (1, 1, w, cin), lambda i, j: (i, jnp.minimum(j * t + t, h - 1), 0, 0))
    w_spec = pl.BlockSpec((3, 3 * cin, cout), lambda i, j: (0, 0, 0))

    in_specs = [x_main_spec, x_top_spec, x_bot_spec]
    inputs = [x_nhwc, x_nhwc, x_nhwc]
    if fuse_act:
        ss_spec = pl.BlockSpec((1, 1, cin), lambda i, j: (0, 0, 0))
        in_specs += [ss_spec, ss_spec]
        inputs += [scale.astype(jnp.float32).reshape(1, 1, cin),
                   shift.astype(jnp.float32).reshape(1, 1, cin)]
    in_specs.append(w_spec)
    inputs.append(w_mat)

    cost = pl.CostEstimate(
        flops=2 * n * h * w * 9 * cin * cout,
        transcendentals=0,
        bytes_accessed=(x_nhwc.size * x_nhwc.dtype.itemsize
                        + w_mat.size * w_mat.dtype.itemsize
                        + n * h * w * cout * 2 + 2 * n * num_h * cout * 4),
    )

    y_pre, ch_sum, ch_sq = pl.pallas_call(
        kernel,
        grid=(n, num_h),
        in_specs=in_specs,
        out_specs=(
            pl.BlockSpec((1, t, w, cout), lambda i, j: (i, j, 0, 0)),
            pl.BlockSpec((1, 1, 1, cout), lambda i, j: (i, j, 0, 0)),
            pl.BlockSpec((1, 1, 1, cout), lambda i, j: (i, j, 0, 0)),
        ),
        out_shape=(
            jax.ShapeDtypeStruct((n, h, w, cout), COMPUTE_DTYPE),
            jax.ShapeDtypeStruct((n, num_h, 1, cout), jnp.float32),
            jax.ShapeDtypeStruct((n, num_h, 1, cout), jnp.float32),
        ),
        compiler_params=pltpu.CompilerParams(
            dimension_semantics=("parallel", "parallel"),
            vmem_limit_bytes=_vmem_limit_bytes()),
        cost_estimate=cost,
    )(*inputs)
    return y_pre, ch_sum, ch_sq


# ---------------------------------------------------------------------------
# Kernel 3: elementwise BatchNorm(scale/shift) + ReLU, stored straight to NCHW
# ---------------------------------------------------------------------------
def _bn_relu_out_kernel(y_ref, scale_ref, shift_ref, o_ref, *, nchw_direct):
    y = y_ref[0].astype(jnp.float32)                               # (T, W, C)
    a = jnp.maximum(y * scale_ref[...] + shift_ref[...], 0.0)      # (T, W, C)
    if nchw_direct:
        t, w, c = a.shape
        o_ref[...] = a.reshape(t * w, c).T[None].astype(o_ref.dtype)  # (1,C,T*W)
    else:
        o_ref[...] = a[None].astype(o_ref.dtype)                   # (1, T, W, C)


def _bn_relu_to_nchw(y_pre, scale, shift, tile_h):
    n, h, w, c = y_pre.shape
    t = tile_h
    num_h = h // t
    nchw_direct = ((t * w) % 128 == 0) or (t == h)
    kernel = functools.partial(_bn_relu_out_kernel, nchw_direct=nchw_direct)

    in_specs = [
        pl.BlockSpec((1, t, w, c), lambda i, j: (i, j, 0, 0)),
        pl.BlockSpec((1, 1, c), lambda i, j: (0, 0, 0)),
        pl.BlockSpec((1, 1, c), lambda i, j: (0, 0, 0)),
    ]
    if nchw_direct:
        out_spec = pl.BlockSpec((1, c, t * w), lambda i, j: (i, 0, j))
        out_shape = jax.ShapeDtypeStruct((n, c, h * w), jnp.float32)
    else:
        out_spec = pl.BlockSpec((1, t, w, c), lambda i, j: (i, j, 0, 0))
        out_shape = jax.ShapeDtypeStruct((n, h, w, c), jnp.float32)

    out = pl.pallas_call(
        kernel,
        grid=(n, num_h),
        in_specs=in_specs,
        out_specs=out_spec,
        out_shape=out_shape,
        compiler_params=pltpu.CompilerParams(
            dimension_semantics=("parallel", "parallel"),
            vmem_limit_bytes=_vmem_limit_bytes()),
    )(y_pre,
      scale.astype(jnp.float32).reshape(1, 1, c),
      shift.astype(jnp.float32).reshape(1, 1, c))

    if nchw_direct:
        return out.reshape(n, c, h, w)       # free metadata reshape
    # TODO(synk): fallback path keeps the XLA NHWC->NCHW transpose (extra copy).
    return jnp.transpose(out, (0, 3, 1, 2))


# ---------------------------------------------------------------------------
# Wrapper-side helpers
# ---------------------------------------------------------------------------
def _bn_scale_shift(ch_sum, ch_sq, gamma, beta, count):
    """Fold training-mode batch stats + affine into one scale/shift per channel."""
    s = jnp.sum(ch_sum, axis=(0, 1, 2))                  # (C,)
    sq = jnp.sum(ch_sq, axis=(0, 1, 2))                  # (C,)
    mean = s / count
    var = jnp.maximum(sq / count - mean * mean, 0.0)     # biased batch variance
    scale = gamma.astype(jnp.float32) * lax.rsqrt(var + EPS)
    shift = beta.astype(jnp.float32) - mean * scale
    return scale, shift


def _fold_weight(w_oihw):
    """OIHW (Cout, Cin, 3, 3) -> (3, 3*Cin, Cout): (kw, ci) folded together."""
    c_out, c_in = w_oihw.shape[0], w_oihw.shape[1]
    w_hwio = jnp.transpose(w_oihw, (2, 3, 1, 0))         # (kh, kw, ci, co)
    return w_hwio.reshape(3, 3 * c_in, c_out).astype(COMPUTE_DTYPE)


@functools.partial(jax.jit, static_argnames=("tile_h",))
def double_conv(x_nchw, w1_oihw, g1, b1, w2_oihw, g2, b2, *, tile_h=None):
    """DoubleConv forward (training-mode BatchNorm), NCHW in / NCHW out."""
    n, c_in, h, w = x_nchw.shape
    c_mid, c_out = w1_oihw.shape[0], w2_oihw.shape[0]
    if tile_h is None:
        tile_h = _pick_tile_h(h, w, c_in, c_mid, c_out)
    assert h % tile_h == 0, (h, tile_h)   # TODO(synk): ragged last row-tile
    count = n * h * w

    x_nhwc = jnp.transpose(x_nchw, (0, 2, 3, 1)).astype(COMPUTE_DTYPE)
    w1_mat = _fold_weight(w1_oihw)
    w2_mat = _fold_weight(w2_oihw)

    # conv1 -> pre-BN y1 + batch stats
    y1, s1, q1 = _conv3x3_bn_stats(x_nhwc, w1_mat, None, None, tile_h)
    scale1, shift1 = _bn_scale_shift(s1, q1, g1, b1, count)

    # conv2 with BN1+ReLU fused into its input path -> pre-BN y2 + stats
    y2, s2, q2 = _conv3x3_bn_stats(y1, w2_mat, scale1, shift1, tile_h)
    scale2, shift2 = _bn_scale_shift(s2, q2, g2, b2, count)

    # BN2 + ReLU, written straight to NCHW f32
    return _bn_relu_to_nchw(y2, scale2, shift2, tile_h)


def reference(x_nchw, w1_oihw, g1, b1, w2_oihw, g2, b2):
    """Pure-JAX f32 reference of the PyTorch forward (training-mode BatchNorm)."""
    def conv(x, w):
        return lax.conv_general_dilated(
            x, w, window_strides=(1, 1), padding=((1, 1), (1, 1)),
            dimension_numbers=("NCHW", "OIHW", "NCHW"))

    def bn_relu(y, g, b):
        mean = y.mean(axis=(0, 2, 3), keepdims=True)
        var = ((y - mean) ** 2).mean(axis=(0, 2, 3), keepdims=True)
        yhat = (y - mean) / jnp.sqrt(var + EPS)
        return jnp.maximum(yhat * g.reshape(1, -1, 1, 1)
                           + b.reshape(1, -1, 1, 1), 0.0)

    y = bn_relu(conv(x_nchw, w1_oihw), g1, b1)
    return bn_relu(conv(y, w2_oihw), g2, b2)


if __name__ == "__main__":
    # Small shapes consistent with DoubleConv(in_channels=4, out_channels=8)
    n, c_in, h, w = 2, 4, 16, 16
    c_mid = c_out = 8  # mid_channels defaults to out_channels

    key = jax.random.PRNGKey(0)
    kx, kw1, kw2 = jax.random.split(key, 3)

    x = jax.random.normal(kx, (n, c_in, h, w), dtype=jnp.float32)
    w1 = 0.1 * jax.random.normal(kw1, (c_mid, c_in, 3, 3), dtype=jnp.float32)
    w2 = 0.1 * jax.random.normal(kw2, (c_out, c_mid, 3, 3), dtype=jnp.float32)
    # BatchNorm affine params at PyTorch defaults (weight=1, bias=0)
    g1 = jnp.ones((c_mid,), jnp.float32)
    b1 = jnp.zeros((c_mid,), jnp.float32)
    g2 = jnp.ones((c_out,), jnp.float32)
    b2 = jnp.zeros((c_out,), jnp.float32)

    # tile_h=8 -> 2 row-tiles per image: exercises the clamped halo index maps,
    # the cross-tile (per-tile) BatchNorm statistics, the fused BN1+ReLU conv2
    # input path and the NCHW-direct (C, T*W) store path.
    out = jax.block_until_ready(double_conv(x, w1, g1, b1, w2, g2, b2, tile_h=8))
    ref = jax.block_until_ready(reference(x, w1, g1, b1, w2, g2, b2))

    assert out.shape == (n, c_out, h, w), out.shape
    max_err = float(jnp.max(jnp.abs(out - ref)))
    # bf16 matmul operands (f32 accumulation) vs. the f32 reference.
    assert jnp.allclose(out, ref, atol=3e-2, rtol=3e-2), \
        f"max abs diff {max_err}"

    print("KERNEL_OK")
</pallas_src>

<mosaic_0001>
module attributes {stable_mosaic.version = 11 : i64} {
  func.func @_conv3x3_bn_stats_kernel(%arg0: i32, %arg1: i32, %arg2: memref<1x8x16x4xbf16, #tpu.memory_space<vmem>>, %arg3: memref<1x1x16x4xbf16, #tpu.memory_space<vmem>>, %arg4: memref<1x1x16x4xbf16, #tpu.memory_space<vmem>>, %arg5: memref<3x12x8xbf16, #tpu.memory_space<vmem>>, %arg6: memref<1x8x16x8xbf16, #tpu.memory_space<vmem>>, %arg7: memref<1x1x1x8xf32, #tpu.memory_space<vmem>>, %arg8: memref<1x1x1x8xf32, #tpu.memory_space<vmem>>) attributes {dimension_semantics = [#tpu.dimension_semantics<parallel>, #tpu.dimension_semantics<parallel>], iteration_bounds = array<i64: 2, 2>, scalar_prefetch = 0 : i64, scratch_operands = 0 : i64, tpu.core_type = #tpu.core_type<tc>, window_params = [{transform_indices = @transform_0, window_bounds = array<i64: 1, 8, 16, 4>}, {transform_indices = @transform_1, window_bounds = array<i64: 1, 1, 16, 4>}, {transform_indices = @transform_2, window_bounds = array<i64: 1, 1, 16, 4>}, {pipeline_mode = #tpu.pipeline_mode<synchronous>, transform_indices = @transform_3, window_bounds = array<i64: 3, 12, 8>}, {transform_indices = @transform_4, window_bounds = array<i64: 1, 8, 16, 8>}, {transform_indices = @transform_5, window_bounds = array<i64: 1, 1, 1, 8>}, {transform_indices = @transform_6, window_bounds = array<i64: 1, 1, 1, 8>}]} {
    %c0 = arith.constant 0 : index
    %c0_0 = arith.constant 0 : index
    %c0_1 = arith.constant 0 : index
    %c0_2 = arith.constant 0 : index
    %0 = vector.load %arg2[%c0, %c0_0, %c0_1, %c0_2] : memref<1x8x16x4xbf16, #tpu.memory_space<vmem>>, vector<1x8x16x4xbf16>
    %1 = vector.shape_cast %0 : vector<1x8x16x4xbf16> to vector<8x16x4xbf16>
    %c0_3 = arith.constant 0 : index
    %c0_4 = arith.constant 0 : index
    %c0_5 = arith.constant 0 : index
    %c0_6 = arith.constant 0 : index
    %2 = vector.load %arg3[%c0_3, %c0_4, %c0_5, %c0_6] : memref<1x1x16x4xbf16, #tpu.memory_space<vmem>>, vector<1x1x16x4xbf16>
    %3 = vector.shape_cast %2 : vector<1x1x16x4xbf16> to vector<1x16x4xbf16>
    %c0_7 = arith.constant 0 : index
    %c0_8 = arith.constant 0 : index
    %c0_9 = arith.constant 0 : index
    %c0_10 = arith.constant 0 : index
    %4 = vector.load %arg4[%c0_7, %c0_8, %c0_9, %c0_10] : memref<1x1x16x4xbf16, #tpu.memory_space<vmem>>, vector<1x1x16x4xbf16>
    %5 = vector.shape_cast %4 : vector<1x1x16x4xbf16> to vector<1x16x4xbf16>
    %c0_i32 = arith.constant 0 : i32
    %6 = arith.cmpi sgt, %arg1, %c0_i32 : i32
    %7 = arith.extui %6 : i1 to i32
    %8 = arith.sitofp %7 : i32 to f32
    %9 = arith.truncf %8 : f32 to bf16
    %10 = vector.broadcast %9 : bf16 to vector<1x16x4xbf16>
    %11 = arith.mulf %3, %10 : vector<1x16x4xbf16>
    %c1_i32 = arith.constant 1 : i32
    %12 = arith.cmpi slt, %arg1, %c1_i32 : i32
    %13 = arith.extui %12 : i1 to i32
    %14 = arith.sitofp %13 : i32 to f32
    %15 = arith.truncf %14 : f32 to bf16
    %16 = vector.broadcast %15 : bf16 to vector<1x16x4xbf16>
    %17 = arith.mulf %5, %16 : vector<1x16x4xbf16>
    %18 = tpu.concatenate %11, %1, %17 in 0 : vector<1x16x4xbf16>, vector<8x16x4xbf16>, vector<1x16x4xbf16> -> vector<10x16x4xbf16>
    %cst = arith.constant 0.000000e+00 : bf16
    %19 = vector.broadcast %cst : bf16 to vector<10x1x4xbf16>
    %20 = tpu.concatenate %19, %18, %19 in 1 : vector<10x1x4xbf16>, vector<10x16x4xbf16>, vector<10x1x4xbf16> -> vector<10x18x4xbf16>
    %21 = vector.extract_strided_slice %20 {offsets = [0, 0, 0], sizes = [10, 16, 4], strides = [1, 1, 1]} : vector<10x18x4xbf16> to vector<10x16x4xbf16>
    %22 = vector.extract_strided_slice %20 {offsets = [0, 1, 0], sizes = [10, 16, 4], strides = [1, 1, 1]} : vector<10x18x4xbf16> to vector<10x16x4xbf16>
    %23 = vector.extract_strided_slice %20 {offsets = [0, 2, 0], sizes = [10, 16, 4], strides = [1, 1, 1]} : vector<10x18x4xbf16> to vector<10x16x4xbf16>
    %24 = tpu.concatenate %21, %22, %23 in 2 : vector<10x16x4xbf16>, vector<10x16x4xbf16>, vector<10x16x4xbf16> -> vector<10x16x12xbf16>
    %cst_11 = arith.constant 0.000000e+00 : f32
    %25 = vector.broadcast %cst_11 : f32 to vector<128x8xf32>
    %26 = vector.extract_strided_slice %24 {offsets = [0, 0, 0], sizes = [8, 16, 12], strides = [1, 1, 1]} : vector<10x16x12xbf16> to vector<8x16x12xbf16>
    %27 = vector.shape_cast %26 : vector<8x16x12xbf16> to vector<128x12xbf16>
    %c0_12 = arith.constant 0 : index
    %c0_13 = arith.constant 0 : index
    %c0_14 = arith.constant 0 : index
    %28 = vector.load %arg5[%c0_12, %c0_13, %c0_14] : memref<3x12x8xbf16, #tpu.memory_space<vmem>>, vector<1x12x8xbf16>
    %29 = vector.shape_cast %28 : vector<1x12x8xbf16> to vector<12x8xbf16>
    %cst_15 = arith.constant dense<0.000000e+00> : vector<128x8xf32>
    %30 = tpu.matmul %27, %29, %cst_15 {dimension_numbers = #tpu.dot_dimension_numbers<[1], [0], [0], [1], [0, 0, 1, 1], [], []>} : vector<128x12xbf16>, vector<12x8xbf16>, vector<128x8xf32> -> vector<128x8xf32>
    %31 = arith.addf %25, %30 : vector<128x8xf32>
    %32 = vector.extract_strided_slice %24 {offsets = [1, 0, 0], sizes = [8, 16, 12], strides = [1, 1, 1]} : vector<10x16x12xbf16> to vector<8x16x12xbf16>
    %33 = vector.shape_cast %32 : vector<8x16x12xbf16> to vector<128x12xbf16>
    %c1 = arith.constant 1 : index
    %c0_16 = arith.constant 0 : index
    %c0_17 = arith.constant 0 : index
    %34 = vector.load %arg5[%c1, %c0_16, %c0_17] : memref<3x12x8xbf16, #tpu.memory_space<vmem>>, vector<1x12x8xbf16>
    %35 = vector.shape_cast %34 : vector<1x12x8xbf16> to vector<12x8xbf16>
    %cst_18 = arith.constant dense<0.000000e+00> : vector<128x8xf32>
    %36 = tpu.matmul %33, %35, %cst_18 {dimension_numbers = #tpu.dot_dimension_numbers<[1], [0], [0], [1], [0, 0, 1, 1], [], []>} : vector<128x12xbf16>, vector<12x8xbf16>, vector<128x8xf32> -> vector<128x8xf32>
    %37 = arith.addf %31, %36 : vector<128x8xf32>
    %38 = vector.extract_strided_slice %24 {offsets = [2, 0, 0], sizes = [8, 16, 12], strides = [1, 1, 1]} : vector<10x16x12xbf16> to vector<8x16x12xbf16>
    %39 = vector.shape_cast %38 : vector<8x16x12xbf16> to vector<128x12xbf16>
    %c2 = arith.constant 2 : index
    %c0_19 = arith.constant 0 : index
    %c0_20 = arith.constant 0 : index
    %40 = vector.load %arg5[%c2, %c0_19, %c0_20] : memref<3x12x8xbf16, #tpu.memory_space<vmem>>, vector<1x12x8xbf16>
    %41 = vector.shape_cast %40 : vector<1x12x8xbf16> to vector<12x8xbf16>
    %cst_21 = arith.constant dense<0.000000e+00> : vector<128x8xf32>
    %42 = tpu.matmul %39, %41, %cst_21 {dimension_numbers = #tpu.dot_dimension_numbers<[1], [0], [0], [1], [0, 0, 1, 1], [], []>} : vector<128x12xbf16>, vector<12x8xbf16>, vector<128x8xf32> -> vector<128x8xf32>
    %43 = arith.addf %37, %42 : vector<128x8xf32>
    %44 = arith.truncf %43 : vector<128x8xf32> to vector<128x8xbf16>
    %45 = vector.shape_cast %44 : vector<128x8xbf16> to vector<1x8x16x8xbf16>
    %c0_22 = arith.constant 0 : index
    %c0_23 = arith.constant 0 : index
    %c0_24 = arith.constant 0 : index
    %c0_25 = arith.constant 0 : index
    %46 = vector.load %arg6[%c0_22, %c0_23, %c0_24, %c0_25] : memref<1x8x16x8xbf16, #tpu.memory_space<vmem>>, vector<1x8x16x8xbf16>
    tpu.vector_store %arg6[%c0_22, %c0_23, %c0_24, %c0_25], %45 {strides = array<i32>} : memref<1x8x16x8xbf16, #tpu.memory_space<vmem>>, vector<1x8x16x8xbf16>,
    %47 = arith.extf %44 : vector<128x8xbf16> to vector<128x8xf32>
    %cst_26 = arith.constant dense<0.000000e+00> : vector<8xf32>
    %48 = vector.multi_reduction <add>, %47, %cst_26 [0] : vector<128x8xf32> to vector<8xf32>
    %49 = vector.shape_cast %48 : vector<8xf32> to vector<1x8xf32>
    %50 = vector.shape_cast %49 : vector<1x8xf32> to vector<1x1x1x8xf32>
    %c0_27 = arith.constant 0 : index
    %c0_28 = arith.constant 0 : index
    %c0_29 = arith.constant 0 : index
    %c0_30 = arith.constant 0 : index
    %51 = vector.load %arg7[%c0_27, %c0_28, %c0_29, %c0_30] : memref<1x1x1x8xf32, #tpu.memory_space<vmem>>, vector<1x1x1x8xf32>
    tpu.vector_store %arg7[%c0_27, %c0_28, %c0_29, %c0_30], %50 {strides = array<i32>} : memref<1x1x1x8xf32, #tpu.memory_space<vmem>>, vector<1x1x1x8xf32>,
    %52 = arith.mulf %47, %47 : vector<128x8xf32>
    %cst_31 = arith.constant dense<0.000000e+00> : vector<8xf32>
    %53 = vector.multi_reduction <add>, %52, %cst_31 [0] : vector<128x8xf32> to vector<8xf32>
    %54 = vector.shape_cast %53 : vector<8xf32> to vector<1x8xf32>
    %55 = vector.shape_cast %54 : vector<1x8xf32> to vector<1x1x1x8xf32>
    %c0_32 = arith.constant 0 : index
    %c0_33 = arith.constant 0 : index
    %c0_34 = arith.constant 0 : index
    %c0_35 = arith.constant 0 : index
    %56 = vector.load %arg8[%c0_32, %c0_33, %c0_34, %c0_35] : memref<1x1x1x8xf32, #tpu.memory_space<vmem>>, vector<1x1x1x8xf32>
    tpu.vector_store %arg8[%c0_32, %c0_33, %c0_34, %c0_35], %55 {strides = array<i32>} : memref<1x1x1x8xf32, #tpu.memory_space<vmem>>, vector<1x1x1x8xf32>,
    return
  }
  func.func @transform_0(%arg0: i32, %arg1: i32) -> (i32, i32, i32, i32) {
    %c0_i32 = arith.constant 0 : i32
    %c0_i32_0 = arith.constant 0 : i32
    %c0_i32_1 = arith.constant 0 : i32
    return %arg0, %arg1, %c0_i32, %c0_i32_0 : i32, i32, i32, i32
  }
  func.func @transform_1(%arg0: i32, %arg1: i32) -> (i32, i32, i32, i32) {
    %c8_i32 = arith.constant 8 : i32
    %0 = arith.muli %arg1, %c8_i32 : i32
    %c1_i32 = arith.constant 1 : i32
    %1 = arith.subi %0, %c1_i32 : i32
    %c0_i32 = arith.constant 0 : i32
    %2 = arith.maxsi %1, %c0_i32 : i32
    %c0_i32_0 = arith.constant 0 : i32
    %c0_i32_1 = arith.constant 0 : i32
    %c0_i32_2 = arith.constant 0 : i32
    return %arg0, %2, %c0_i32_0, %c0_i32_1 : i32, i32, i32, i32
  }
  func.func @transform_2(%arg0: i32, %arg1: i32) -> (i32, i32, i32, i32) {
    %c8_i32 = arith.constant 8 : i32
    %0 = arith.muli %arg1, %c8_i32 : i32
    %c8_i32_0 = arith.constant 8 : i32
    %1 = arith.addi %0, %c8_i32_0 : i32
    %c15_i32 = arith.constant 15 : i32
    %2 = arith.minsi %1, %c15_i32 : i32
    %c0_i32 = arith.constant 0 : i32
    %c0_i32_1 = arith.constant 0 : i32
    %c0_i32_2 = arith.constant 0 : i32
    return %arg0, %2, %c0_i32, %c0_i32_1 : i32, i32, i32, i32
  }
  func.func @transform_3(%arg0: i32, %arg1: i32) -> (i32, i32, i32) {
    %c0_i32 = arith.constant 0 : i32
    %c0_i32_0 = arith.constant 0 : i32
    %c0_i32_1 = arith.constant 0 : i32
    %c0_i32_2 = arith.constant 0 : i32
    return %c0_i32, %c0_i32_0, %c0_i32_1 : i32, i32, i32
  }
  func.func @transform_4(%arg0: i32, %arg1: i32) -> (i32, i32, i32, i32) {
    %c0_i32 = arith.constant 0 : i32
    %c0_i32_0 = arith.constant 0 : i32
    %c0_i32_1 = arith.constant 0 : i32
    return %arg0, %arg1, %c0_i32, %c0_i32_0 : i32, i32, i32, i32
  }
  func.func @transform_5(%arg0: i32, %arg1: i32) -> (i32, i32, i32, i32) {
    %c0_i32 = arith.constant 0 : i32
    %c0_i32_0 = arith.constant 0 : i32
    %c0_i32_1 = arith.constant 0 : i32
    return %arg0, %arg1, %c0_i32, %c0_i32_0 : i32, i32, i32, i32
  }
  func.func @transform_6(%arg0: i32, %arg1: i32) -> (i32, i32, i32, i32) {
    %c0_i32 = arith.constant 0 : i32
    %c0_i32_0 = arith.constant 0 : i32
    %c0_i32_1 = arith.constant 0 : i32
    return %arg0, %arg1, %c0_i32, %c0_i32_0 : i32, i32, i32, i32
  }
}

module attributes {stable_mosaic.version = 11 : i64} {
  func.func @_bn_relu_out_kernel(%arg0: i32, %arg1: i32, %arg2: memref<1x8x16x8xbf16, #tpu.memory_space<vmem>>, %arg3: memref<1x1x8xf32, #tpu.memory_space<vmem>>, %arg4: memref<1x1x8xf32, #tpu.memory_space<vmem>>, %arg5: memref<1x8x128xf32, #tpu.memory_space<vmem>>) attributes {dimension_semantics = [#tpu.dimension_semantics<parallel>, #tpu.dimension_semantics<parallel>], iteration_bounds = array<i64: 2, 2>, scalar_prefetch = 0 : i64, scratch_operands = 0 : i64, tpu.core_type = #tpu.core_type<tc>, window_params = [{transform_indices = @transform_0, window_bounds = array<i64: 1, 8, 16, 8>}, {pipeline_mode = #tpu.pipeline_mode<synchronous>, transform_indices = @transform_1, window_bounds = array<i64: 1, 1, 8>}, {pipeline_mode = #tpu.pipeline_mode<synchronous>, transform_indices = @transform_2, window_bounds = array<i64: 1, 1, 8>}, {transform_indices = @transform_3, window_bounds = array<i64: 1, 8, 128>}]} {
    %c0 = arith.constant 0 : index
    %c0_0 = arith.constant 0 : index
    %c0_1 = arith.constant 0 : index
    %c0_2 = arith.constant 0 : index
    %0 = vector.load %arg2[%c0, %c0_0, %c0_1, %c0_2] : memref<1x8x16x8xbf16, #tpu.memory_space<vmem>>, vector<1x8x16x8xbf16>
    %1 = vector.shape_cast %0 : vector<1x8x16x8xbf16> to vector<8x16x8xbf16>
    %2 = arith.extf %1 : vector<8x16x8xbf16> to vector<8x16x8xf32>
    %c0_3 = arith.constant 0 : index
    %c0_4 = arith.constant 0 : index
    %c0_5 = arith.constant 0 : index
    %3 = vector.load %arg3[%c0_3, %c0_4, %c0_5] : memref<1x1x8xf32, #tpu.memory_space<vmem>>, vector<1x1x8xf32>
    %4 = vector.broadcast %3 : vector<1x1x8xf32> to vector<8x16x8xf32>
    %5 = arith.mulf %2, %4 : vector<8x16x8xf32>
    %c0_6 = arith.constant 0 : index
    %c0_7 = arith.constant 0 : index
    %c0_8 = arith.constant 0 : index
    %6 = vector.load %arg4[%c0_6, %c0_7, %c0_8] : memref<1x1x8xf32, #tpu.memory_space<vmem>>, vector<1x1x8xf32>
    %7 = vector.broadcast %6 : vector<1x1x8xf32> to vector<8x16x8xf32>
    %8 = arith.addf %5, %7 : vector<8x16x8xf32>
    %cst = arith.constant 0.000000e+00 : f32
    %9 = vector.broadcast %cst : f32 to vector<8x16x8xf32>
    %10 = arith.maximumf %8, %9 : vector<8x16x8xf32>
    %11 = vector.shape_cast %10 : vector<8x16x8xf32> to vector<128x8xf32>
    %12 = tpu.transpose %11, [1, 0] : vector<128x8xf32> -> vector<8x128xf32>
    %13 = vector.shape_cast %12 : vector<8x128xf32> to vector<1x8x128xf32>
    %c0_9 = arith.constant 0 : index
    %c0_10 = arith.constant 0 : index
    %c0_11 = arith.constant 0 : index
    %14 = vector.load %arg5[%c0_9, %c0_10, %c0_11] : memref<1x8x128xf32, #tpu.memory_space<vmem>>, vector<1x8x128xf32>
    tpu.vector_store %arg5[%c0_9, %c0_10, %c0_11], %13 {strides = array<i32>} : memref<1x8x128xf32, #tpu.memory_space<vmem>>, vector<1x8x128xf32>,
    return
  }
  func.func @transform_0(%arg0: i32, %arg1: i32) -> (i32, i32, i32, i32) {
    %c0_i32 = arith.constant 0 : i32
    %c0_i32_0 = arith.constant 0 : i32
    %c0_i32_1 = arith.constant 0 : i32
    return %arg0, %arg1, %c0_i32, %c0_i32_0 : i32, i32, i32, i32
  }
  func.func @transform_1(%arg0: i32, %arg1: i32) -> (i32, i32, i32) {
    %c0_i32 = arith.constant 0 : i32
    %c0_i32_0 = arith.constant 0 : i32
    %c0_i32_1 = arith.constant 0 : i32
    %c0_i32_2 = arith.constant 0 : i32
    return %c0_i32, %c0_i32_0, %c0_i32_1 : i32, i32, i32
  }
  func.func @transform_2(%arg0: i32, %arg1: i32) -> (i32, i32, i32) {
    %c0_i32 = arith.constant 0 : i32
    %c0_i32_0 = arith.constant 0 : i32
    %c0_i32_1 = arith.constant 0 : i32
    %c0_i32_2 = arith.constant 0 : i32
    return %c0_i32, %c0_i32_0, %c0_i32_1 : i32, i32, i32
  }
  func.func @transform_3(%arg0: i32, %arg1: i32) -> (i32, i32, i32) {
    %c0_i32 = arith.constant 0 : i32
    %c0_i32_0 = arith.constant 0 : i32
    return %arg0, %c0_i32, %arg1 : i32, i32, i32
  }
}

module attributes {stable_mosaic.version = 11 : i64} {
  func.func @_conv3x3_bn_stats_kernel(%arg0: i32, %arg1: i32, %arg2: memref<1x8x16x8xbf16, #tpu.memory_space<vmem>>, %arg3: memref<1x1x16x8xbf16, #tpu.memory_space<vmem>>, %arg4: memref<1x1x16x8xbf16, #tpu.memory_space<vmem>>, %arg5: memref<1x1x8xf32, #tpu.memory_space<vmem>>, %arg6: memref<1x1x8xf32, #tpu.memory_space<vmem>>, %arg7: memref<3x24x8xbf16, #tpu.memory_space<vmem>>, %arg8: memref<1x8x16x8xbf16, #tpu.memory_space<vmem>>, %arg9: memref<1x1x1x8xf32, #tpu.memory_space<vmem>>, %arg10: memref<1x1x1x8xf32, #tpu.memory_space<vmem>>) attributes {dimension_semantics = [#tpu.dimension_semantics<parallel>, #tpu.dimension_semantics<parallel>], iteration_bounds = array<i64: 2, 2>, scalar_prefetch = 0 : i64, scratch_operands = 0 : i64, tpu.core_type = #tpu.core_type<tc>, window_params = [{transform_indices = @transform_0, window_bounds = array<i64: 1, 8, 16, 8>}, {transform_indices = @transform_1, window_bounds = array<i64: 1, 1, 16, 8>}, {transform_indices = @transform_2, window_bounds = array<i64: 1, 1, 16, 8>}, {pipeline_mode = #tpu.pipeline_mode<synchronous>, transform_indices = @transform_3, window_bounds = array<i64: 1, 1, 8>}, {pipeline_mode = #tpu.pipeline_mode<synchronous>, transform_indices = @transform_4, window_bounds = array<i64: 1, 1, 8>}, {pipeline_mode = #tpu.pipeline_mode<synchronous>, transform_indices = @transform_5, window_bounds = array<i64: 3, 24, 8>}, {transform_indices = @transform_6, window_bounds = array<i64: 1, 8, 16, 8>}, {transform_indices = @transform_7, window_bounds = array<i64: 1, 1, 1, 8>}, {transform_indices = @transform_8, window_bounds = array<i64: 1, 1, 1, 8>}]} {
    %c0 = arith.constant 0 : index
    %c0_0 = arith.constant 0 : index
    %c0_1 = arith.constant 0 : index
    %c0_2 = arith.constant 0 : index
    %0 = vector.load %arg2[%c0, %c0_0, %c0_1, %c0_2] : memref<1x8x16x8xbf16, #tpu.memory_space<vmem>>, vector<1x8x16x8xbf16>
    %1 = vector.shape_cast %0 : vector<1x8x16x8xbf16> to vector<8x16x8xbf16>
    %c0_3 = arith.constant 0 : index
    %c0_4 = arith.constant 0 : index
    %c0_5 = arith.constant 0 : index
    %c0_6 = arith.constant 0 : index
    %2 = vector.load %arg3[%c0_3, %c0_4, %c0_5, %c0_6] : memref<1x1x16x8xbf16, #tpu.memory_space<vmem>>, vector<1x1x16x8xbf16>
    %3 = vector.shape_cast %2 : vector<1x1x16x8xbf16> to vector<1x16x8xbf16>
    %c0_7 = arith.constant 0 : index
    %c0_8 = arith.constant 0 : index
    %c0_9 = arith.constant 0 : index
    %c0_10 = arith.constant 0 : index
    %4 = vector.load %arg4[%c0_7, %c0_8, %c0_9, %c0_10] : memref<1x1x16x8xbf16, #tpu.memory_space<vmem>>, vector<1x1x16x8xbf16>
    %5 = vector.shape_cast %4 : vector<1x1x16x8xbf16> to vector<1x16x8xbf16>
    %c0_11 = arith.constant 0 : index
    %c0_12 = arith.constant 0 : index
    %c0_13 = arith.constant 0 : index
    %6 = vector.load %arg5[%c0_11, %c0_12, %c0_13] : memref<1x1x8xf32, #tpu.memory_space<vmem>>, vector<1x1x8xf32>
    %c0_14 = arith.constant 0 : index
    %c0_15 = arith.constant 0 : index
    %c0_16 = arith.constant 0 : index
    %7 = vector.load %arg6[%c0_14, %c0_15, %c0_16] : memref<1x1x8xf32, #tpu.memory_space<vmem>>, vector<1x1x8xf32>
    %8 = arith.extf %1 : vector<8x16x8xbf16> to vector<8x16x8xf32>
    %9 = vector.broadcast %6 : vector<1x1x8xf32> to vector<8x16x8xf32>
    %10 = arith.mulf %8, %9 : vector<8x16x8xf32>
    %11 = vector.broadcast %7 : vector<1x1x8xf32> to vector<8x16x8xf32>
    %12 = arith.addf %10, %11 : vector<8x16x8xf32>
    %cst = arith.constant 0.000000e+00 : f32
    %13 = vector.broadcast %cst : f32 to vector<8x16x8xf32>
    %14 = arith.maximumf %12, %13 : vector<8x16x8xf32>
    %15 = arith.truncf %14 : vector<8x16x8xf32> to vector<8x16x8xbf16>
    %16 = arith.extf %3 : vector<1x16x8xbf16> to vector<1x16x8xf32>
    %17 = vector.broadcast %6 : vector<1x1x8xf32> to vector<1x16x8xf32>
    %18 = arith.mulf %16, %17 : vector<1x16x8xf32>
    %19 = vector.broadcast %7 : vector<1x1x8xf32> to vector<1x16x8xf32>
    %20 = arith.addf %18, %19 : vector<1x16x8xf32>
    %cst_17 = arith.constant 0.000000e+00 : f32
    %21 = vector.broadcast %cst_17 : f32 to vector<1x16x8xf32>
    %22 = arith.maximumf %20, %21 : vector<1x16x8xf32>
    %23 = arith.truncf %22 : vector<1x16x8xf32> to vector<1x16x8xbf16>
    %c0_i32 = arith.constant 0 : i32
    %24 = arith.cmpi sgt, %arg1, %c0_i32 : i32
    %25 = arith.extui %24 : i1 to i32
    %26 = arith.sitofp %25 : i32 to f32
    %27 = arith.truncf %26 : f32 to bf16
    %28 = vector.broadcast %27 : bf16 to vector<1x16x8xbf16>
    %29 = arith.mulf %23, %28 : vector<1x16x8xbf16>
    %30 = arith.extf %5 : vector<1x16x8xbf16> to vector<1x16x8xf32>
    %31 = vector.broadcast %6 : vector<1x1x8xf32> to vector<1x16x8xf32>
    %32 = arith.mulf %30, %31 : vector<1x16x8xf32>
    %33 = vector.broadcast %7 : vector<1x1x8xf32> to vector<1x16x8xf32>
    %34 = arith.addf %32, %33 : vector<1x16x8xf32>
    %cst_18 = arith.constant 0.000000e+00 : f32
    %35 = vector.broadcast %cst_18 : f32 to vector<1x16x8xf32>
    %36 = arith.maximumf %34, %35 : vector<1x16x8xf32>
    %37 = arith.truncf %36 : vector<1x16x8xf32> to vector<1x16x8xbf16>
    %c1_i32 = arith.constant 1 : i32
    %38 = arith.cmpi slt, %arg1, %c1_i32 : i32
    %39 = arith.extui %38 : i1 to i32
    %40 = arith.sitofp %39 : i32 to f32
    %41 = arith.truncf %40 : f32 to bf16
    %42 = vector.broadcast %41 : bf16 to vector<1x16x8xbf16>
    %43 = arith.mulf %37, %42 : vector<1x16x8xbf16>
    %44 = tpu.concatenate %29, %15, %43 in 0 : vector<1x16x8xbf16>, vector<8x16x8xbf16>, vector<1x16x8xbf16> -> vector<10x16x8xbf16>
    %cst_19 = arith.constant 0.000000e+00 : bf16
    %45 = vector.broadcast %cst_19 : bf16 to vector<10x1x8xbf16>
    %46 = tpu.concatenate %45, %44, %45 in 1 : vector<10x1x8xbf16>, vector<10x16x8xbf16>, vector<10x1x8xbf16> -> vector<10x18x8xbf16>
    %47 = vector.extract_strided_slice %46 {offsets = [0, 0, 0], sizes = [10, 16, 8], strides = [1, 1, 1]} : vector<10x18x8xbf16> to vector<10x16x8xbf16>
    %48 = vector.extract_strided_slice %46 {offsets = [0, 1, 0], sizes = [10, 16, 8], strides = [1, 1, 1]} : vector<10x18x8xbf16> to vector<10x16x8xbf16>
    %49 = vector.extract_strided_slice %46 {offsets = [0, 2, 0], sizes = [10, 16, 8], strides = [1, 1, 1]} : vector<10x18x8xbf16> to vector<10x16x8xbf16>
    %50 = tpu.concatenate %47, %48, %49 in 2 : vector<10x16x8xbf16>, vector<10x16x8xbf16>, vector<10x16x8xbf16> -> vector<10x16x24xbf16>
    %cst_20 = arith.constant 0.000000e+00 : f32
    %51 = vector.broadcast %cst_20 : f32 to vector<128x8xf32>
    %52 = vector.extract_strided_slice %50 {offsets = [0, 0, 0], sizes = [8, 16, 24], strides = [1, 1, 1]} : vector<10x16x24xbf16> to vector<8x16x24xbf16>
    %53 = vector.shape_cast %52 : vector<8x16x24xbf16> to vector<128x24xbf16>
    %c0_21 = arith.constant 0 : index
    %c0_22 = arith.constant 0 : index
    %c0_23 = arith.constant 0 : index
    %54 = vector.load %arg7[%c0_21, %c0_22, %c0_23] : memref<3x24x8xbf16, #tpu.memory_space<vmem>>, vector<1x24x8xbf16>
    %55 = vector.shape_cast %54 : vector<1x24x8xbf16> to vector<24x8xbf16>
    %cst_24 = arith.constant dense<0.000000e+00> : vector<128x8xf32>
    %56 = tpu.matmul %53, %55, %cst_24 {dimension_numbers = #tpu.dot_dimension_numbers<[1], [0], [0], [1], [0, 0, 1, 1], [], []>} : vector<128x24xbf16>, vector<24x8xbf16>, vector<128x8xf32> -> vector<128x8xf32>
    %57 = arith.addf %51, %56 : vector<128x8xf32>
    %58 = vector.extract_strided_slice %50 {offsets = [1, 0, 0], sizes = [8, 16, 24], strides = [1, 1, 1]} : vector<10x16x24xbf16> to vector<8x16x24xbf16>
    %59 = vector.shape_cast %58 : vector<8x16x24xbf16> to vector<128x24xbf16>
    %c1 = arith.constant 1 : index
    %c0_25 = arith.constant 0 : index
    %c0_26 = arith.constant 0 : index
    %60 = vector.load %arg7[%c1, %c0_25, %c0_26] : memref<3x24x8xbf16, #tpu.memory_space<vmem>>, vector<1x24x8xbf16>
    %61 = vector.shape_cast %60 : vector<1x24x8xbf16> to vector<24x8xbf16>
    %cst_27 = arith.constant dense<0.000000e+00> : vector<128x8xf32>
    %62 = tpu.matmul %59, %61, %cst_27 {dimension_numbers = #tpu.dot_dimension_numbers<[1], [0], [0], [1], [0, 0, 1, 1], [], []>} : vector<128x24xbf16>, vector<24x8xbf16>, vector<128x8xf32> -> vector<128x8xf32>
    %63 = arith.addf %57, %62 : vector<128x8xf32>
    %64 = vector.extract_strided_slice %50 {offsets = [2, 0, 0], sizes = [8, 16, 24], strides = [1, 1, 1]} : vector<10x16x24xbf16> to vector<8x16x24xbf16>
    %65 = vector.shape_cast %64 : vector<8x16x24xbf16> to vector<128x24xbf16>
    %c2 = arith.constant 2 : index
    %c0_28 = arith.constant 0 : index
    %c0_29 = arith.constant 0 : index
    %66 = vector.load %arg7[%c2, %c0_28, %c0_29] : memref<3x24x8xbf16, #tpu.memory_space<vmem>>, vector<1x24x8xbf16>
    %67 = vector.shape_cast %66 : vector<1x24x8xbf16> to vector<24x8xbf16>
    %cst_30 = arith.constant dense<0.000000e+00> : vector<128x8xf32>
    %68 = tpu.matmul %65, %67, %cst_30 {dimension_numbers = #tpu.dot_dimension_numbers<[1], [0], [0], [1], [0, 0, 1, 1], [], []>} : vector<128x24xbf16>, vector<24x8xbf16>, vector<128x8xf32> -> vector<128x8xf32>
    %69 = arith.addf %63, %68 : vector<128x8xf32>
    %70 = arith.truncf %69 : vector<128x8xf32> to vector<128x8xbf16>
    %71 = vector.shape_cast %70 : vector<128x8xbf16> to vector<1x8x16x8xbf16>
    %c0_31 = arith.constant 0 : index
    %c0_32 = arith.constant 0 : index
    %c0_33 = arith.constant 0 : index
    %c0_34 = arith.constant 0 : index
    %72 = vector.load %arg8[%c0_31, %c0_32, %c0_33, %c0_34] : memref<1x8x16x8xbf16, #tpu.memory_space<vmem>>, vector<1x8x16x8xbf16>
    tpu.vector_store %arg8[%c0_31, %c0_32, %c0_33, %c0_34], %71 {strides = array<i32>} : memref<1x8x16x8xbf16, #tpu.memory_space<vmem>>, vector<1x8x16x8xbf16>,
    %73 = arith.extf %70 : vector<128x8xbf16> to vector<128x8xf32>
    %cst_35 = arith.constant dense<0.000000e+00> : vector<8xf32>
    %74 = vector.multi_reduction <add>, %73, %cst_35 [0] : vector<128x8xf32> to vector<8xf32>
    %75 = vector.shape_cast %74 : vector<8xf32> to vector<1x8xf32>
    %76 = vector.shape_cast %75 : vector<1x8xf32> to vector<1x1x1x8xf32>
    %c0_36 = arith.constant 0 : index
    %c0_37 = arith.constant 0 : index
    %c0_38 = arith.constant 0 : index
    %c0_39 = arith.constant 0 : index
    %77 = vector.load %arg9[%c0_36, %c0_37, %c0_38, %c0_39] : memref<1x1x1x8xf32, #tpu.memory_space<vmem>>, vector<1x1x1x8xf32>
    tpu.vector_store %arg9[%c0_36, %c0_37, %c0_38, %c0_39], %76 {strides = array<i32>} : memref<1x1x1x8xf32, #tpu.memory_space<vmem>>, vector<1x1x1x8xf32>,
    %78 = arith.mulf %73, %73 : vector<128x8xf32>
    %cst_40 = arith.constant dense<0.000000e+00> : vector<8xf32>
    %79 = vector.multi_reduction <add>, %78, %cst_40 [0] : vector<128x8xf32> to vector<8xf32>
    %80 = vector.shape_cast %79 : vector<8xf32> to vector<1x8xf32>
    %81 = vector.shape_cast %80 : vector<1x8xf32> to vector<1x1x1x8xf32>
    %c0_41 = arith.constant 0 : index
    %c0_42 = arith.constant 0 : index
    %c0_43 = arith.constant 0 : index
    %c0_44 = arith.constant 0 : index
    %82 = vector.load %arg10[%c0_41, %c0_42, %c0_43, %c0_44] : memref<1x1x1x8xf32, #tpu.memory_space<vmem>>, vector<1x1x1x8xf32>
    tpu.vector_store %arg10[%c0_41, %c0_42, %c0_43, %c0_44], %81 {strides = array<i32>} : memref<1x1x1x8xf32, #tpu.memory_space<vmem>>, vector<1x1x1x8xf32>,
    return
  }
  func.func @transform_0(%arg0: i32, %arg1: i32) -> (i32, i32, i32, i32) {
    %c0_i32 = arith.constant 0 : i32
    %c0_i32_0 = arith.constant 0 : i32
    %c0_i32_1 = arith.constant 0 : i32
    return %arg0, %arg1, %c0_i32, %c0_i32_0 : i32, i32, i32, i32
  }
  func.func @transform_1(%arg0: i32, %arg1: i32) -> (i32, i32, i32, i32) {
    %c8_i32 = arith.constant 8 : i32
    %0 = arith.muli %arg1, %c8_i32 : i32
    %c1_i32 = arith.constant 1 : i32
    %1 = arith.subi %0, %c1_i32 : i32
    %c0_i32 = arith.constant 0 : i32
    %2 = arith.maxsi %1, %c0_i32 : i32
    %c0_i32_0 = arith.constant 0 : i32
    %c0_i32_1 = arith.constant 0 : i32
    %c0_i32_2 = arith.constant 0 : i32
    return %arg0, %2, %c0_i32_0, %c0_i32_1 : i32, i32, i32, i32
  }
  func.func @transform_2(%arg0: i32, %arg1: i32) -> (i32, i32, i32, i32) {
    %c8_i32 = arith.constant 8 : i32
    %0 = arith.muli %arg1, %c8_i32 : i32
    %c8_i32_0 = arith.constant 8 : i32
    %1 = arith.addi %0, %c8_i32_0 : i32
    %c15_i32 = arith.constant 15 : i32
    %2 = arith.minsi %1, %c15_i32 : i32
    %c0_i32 = arith.constant 0 : i32
    %c0_i32_1 = arith.constant 0 : i32
    %c0_i32_2 = arith.constant 0 : i32
    return %arg0, %2, %c0_i32, %c0_i32_1 : i32, i32, i32, i32
  }
  func.func @transform_3(%arg0: i32, %arg1: i32) -> (i32, i32, i32) {
    %c0_i32 = arith.constant 0 : i32
    %c0_i32_0 = arith.constant 0 : i32
    %c0_i32_1 = arith.constant 0 : i32
    %c0_i32_2 = arith.constant 0 : i32
    return %c0_i32, %c0_i32_0, %c0_i32_1 : i32, i32, i32
  }
  func.func @transform_4(%arg0: i32, %arg1: i32) -> (i32, i32, i32) {
    %c0_i32 = arith.constant 0 : i32
    %c0_i32_0 = arith.constant 0 : i32
    %c0_i32_1 = arith.constant 0 : i32
    %c0_i32_2 = arith.constant 0 : i32
    return %c0_i32, %c0_i32_0, %c0_i32_1 : i32, i32, i32
  }
  func.func @transform_5(%arg0: i32, %arg1: i32) -> (i32, i32, i32) {
    %c0_i32 = arith.constant 0 : i32
    %c0_i32_0 = arith.constant 0 : i32
    %c0_i32_1 = arith.constant 0 : i32
    %c0_i32_2 = arith.constant 0 : i32
    return %c0_i32, %c0_i32_0, %c0_i32_1 : i32, i32, i32
  }
  func.func @transform_6(%arg0: i32, %arg1: i32) -> (i32, i32, i32, i32) {
    %c0_i32 = arith.constant 0 : i32
    %c0_i32_0 = arith.constant 0 : i32
    %c0_i32_1 = arith.constant 0 : i32
    return %arg0, %arg1, %c0_i32, %c0_i32_0 : i32, i32, i32, i32
  }
  func.func @transform_7(%arg0: i32, %arg1: i32) -> (i32, i32, i32, i32) {
    %c0_i32 = arith.constant 0 : i32
    %c0_i32_0 = arith.constant 0 : i32
    %c0_i32_1 = arith.constant 0 : i32
    return %arg0, %arg1, %c0_i32, %c0_i32_0 : i32, i32, i32, i32
  }
  func.func @transform_8(%arg0: i32, %arg1: i32) -> (i32, i32, i32, i32) {
    %c0_i32 = arith.constant 0 : i32
    %c0_i32_0 = arith.constant 0 : i32
    %c0_i32_1 = arith.constant 0 : i32
    return %arg0, %arg1, %c0_i32, %c0_i32_0 : i32, i32, i32, i32
  }
}

</mosaic_0001>

<bundles_post_ra>
// kernel: double_conv.5
= control target key start
LH: loop header
LB: loop body
LE: loop exit
PB: predicated region body
PF: predicated region fallthrough
CT: control target
= control target key end

     0   :  { %s580_s12 = smov 0   ;;  %s582_s13 = smov 0   ;;  %s692_s0 = inlined_call_operand.vmem [shape: bf16[2,16,16,8], index: 0, kind: input, shape index: {}]   ;;  %s693_s1 = inlined_call_operand.vmem [shape: f32[1,1,8], index: 1, kind: input, shape index: {}]   ;;  %s694_s2 = inlined_call_operand.vmem [shape: f32[1,1,8], index: 2, kind: input, shape index: {}]   ;;  %s695_s3 = inlined_call_operand.vmem [shape: f32[2,8,256], index: 3, kind: output, shape index: {}]  }
   0x1   :  { %s584_s14 = smov 0   ;;  %s586_s15 = smov 0  }
   0x2   :  { %s588_s16 = smov 0  }
   0x3 LB: > { %s22_s17 = sadd.s32 1, %s550_s14  ;;  %s25_s18 = sadd.s32 1, %s554_s15  ;;  %s558_s16 = sphi %s588_s16, %s13_s16   ;;  %s554_s15 = sphi %s586_s15, %s699_s15   ;;  %s550_s14 = sphi %s584_s14, %s698_s14   ;;  %s546_s13 = sphi %s582_s13, %s697_s13   ;;  %s542_s12 = sphi %s580_s12, %s696_s12  }
   0x4   : > { %p23_p0 = scmp.ge.s32.totalorder %s22_s17, 2  ;;  %p430_p1 = scmp.ge.s32.totalorder %s558_s16, 1 }
   0x5   : > { %p159_p2 = scmp.lt.s32.totalorder %s558_s16, 5 }
   0x6   : > { %s701_s17 = smov (%p23_p0, %s22_s17), 0  ;;  %s703_s18 = smov (!%p23_p0, %s25_s18), %s554_s15 }
   0x7   : > { %p160_p3 = pnand %p430_p1, %p159_p2  ;;  %p27_p4 = scmp.ge.s32.totalorder %s703_s18, 2 }
   0x8   : > { %s431_s19 = sshll.u32 (!%p160_p3), %s542_s12, 3  ;;  %p192_p5 = scmp.lt.s32.totalorder (!%p160_p3), %s546_s13, 1  ;;  %v625_v1 = vld [vmem:[%s693_s1] ss:$0 sm:$0xff] (!%p160_p3) }
   0x9   : > { %s705_s18 = smov (%p27_p4, %s703_s18), 0  ;;  %163 = sbr.rel (%p160_p3) target bundleno = 160 (0xa0), region = 32 }
   0xa   : > { %p194_p6 = scmp.lt.s32.totalorder (!%p160_p3), %s431_s19, 15  ;;  %v631_v6 = vld [vmem:[%s694_s2] ss:$0 sm:$0xff] (!%p160_p3)  ;;  %p204_p7 = scmp.lt.s32.totalorder (!%p160_p3), %s542_s12, 1 }
  0x10   : > { %s707_s13 = smov (!%p192_p5, %s546_s13), 1  ;;  %s709_s19 = smov (!%p194_p6, %s431_s19), 15 }
  0x11   : > { %s433_s20 = sshll.u32 %s707_s13, 5  ;;  %s432_s21 = sshll.u32 %s709_s19, 1 }
  0x12   : > { %s198_s22 = sadd.s32 %s433_s20, %s432_s21  ;;  %s711_s12 = smov (!%p204_p7, %s542_s12), 1 }
  0x13   : > { %s434_s23 = sshll.u32 %s198_s22, 2  ;;  %s435_s4 = sshll.u32 %s707_s13, 1 }
  0x14   : > { %s619_s26 = scalar_lea.vmem %s692_s0, %s434_s23  ;;  %s207_s5 = sadd.s32 %s435_s4, %s711_s12 }
  0x15   : > { %v442_v0 = vld [vmem:[%s619_s26] sm:$0xff]   ;;  %v473_v2 = vld [vmem:[%s619_s26 + $0x8] sm:$0xff]   ;;  %v474_v13 = vld [vmem:[%s619_s26 + $0x10] sm:$0xff]   ;;  %s436_s6 = sshll.u32 %s207_s5, 3 }
  0x16   : > { %v443_v3 = vunpack.c.l.bf16 %v442_v0  ;;  %v444_v4 = vunpack.c.h.bf16 %v442_v0  ;;  %v447_v5 = vunpack.c.l.bf16 %v473_v2  ;;  %v448_v12 = vunpack.c.h.bf16 %v473_v2  ;;  %v475_v23 = vld [vmem:[%s619_s26 + $0x18] sm:$0xff]   ;;  %v476_v32 = vld [vmem:[%s619_s26 + $0x20] sm:$0xff]   ;;  %v477_v41 = vld [vmem:[%s619_s26 + $0x28] sm:$0xff]   ;;  %s209_s9 = scalar_lea.vmem %s695_s3, %s436_s6 }
  0x17   : > { %v451_v18 = vunpack.c.l.bf16 %v474_v13  ;;  %v452_v22 = vunpack.c.h.bf16 %v474_v13  ;;  %v455_v27 = vunpack.c.l.bf16 %v475_v23  ;;  %v456_v31 = vunpack.c.h.bf16 %v475_v23  ;;  %v478_v50 = vld [vmem:[%s619_s26 + $0x30] sm:$0xff]   ;;  %v479_v59 = vld [vmem:[%s619_s26 + $0x38] sm:$0xff]  }
  0x18   : > { %v249_v7 = vmul.f32 %v443_v3, %v625_v1  ;;  %v250_v8 = vmul.f32 %v444_v4, %v625_v1  ;;  %v251_v11 = vmul.f32 %v447_v5, %v625_v1  ;;  %v252_v17 = vmul.f32 %v448_v12, %v625_v1 }
  0x19   : > { %v253_v21 = vmul.f32 %v451_v18, %v625_v1  ;;  %v254_v26 = vmul.f32 %v452_v22, %v625_v1  ;;  %v255_v30 = vmul.f32 %v455_v27, %v625_v1  ;;  %v256_v35 = vmul.f32 %v456_v31, %v625_v1 }
  0x1a   : > { %v272_v9 = vadd.f32 %v631_v6, %v249_v7  ;;  %v273_v10 = vadd.f32 %v631_v6, %v250_v8  ;;  %v274_v16 = vadd.f32 %v631_v6, %v251_v11  ;;  %v275_v20 = vadd.f32 %v631_v6, %v252_v17 }
  0x1b   : > { %v276_v25 = vadd.f32 %v631_v6, %v253_v21  ;;  %v277_v29 = vadd.f32 %v631_v6, %v254_v26  ;;  %v278_v34 = vadd.f32 %v631_v6, %v255_v30  ;;  %v459_v36 = vunpack.c.l.bf16 %v476_v32 }
  0x1c   : > { %v288_v14 = vmax.f32 %v272_v9, 0.0  ;;  %v289_v15 = vmax.f32 %v273_v10, 0.0  ;;  %v290_v19 = vmax.f32 %v274_v16, 0.0  ;;  %v291_v24 = vmax.f32 %v275_v20, 0.0 }
  0x1d   : > { %v292_v28 = vmax.f32 %v276_v25, 0.0  ;;  %v293_v33 = vmax.f32 %v277_v29, 0.0  ;;  %v294_v37 = vmax.f32 %v278_v34, 0.0  ;;  %v279_v38 = vadd.f32 %v631_v6, %v256_v35 }
  0x1e   : > { %304 = vxpose.xlu0.b32.start [1/16] (narrow) %v288_v14, 8  ;;  %v257_v39 = vmul.f32 %v459_v36, %v625_v1  ;;  %v460_v40 = vunpack.c.h.bf16 %v476_v32  ;;  %v463_v45 = vunpack.c.l.bf16 %v477_v41  ;;  %v464_v49 = vunpack.c.h.bf16 %v477_v41 }
  0x1f   : > { %v295_v42 = vmax.f32 %v279_v38, 0.0  ;;  %v467_v54 = vunpack.c.l.bf16 %v478_v50  ;;  %v468_v58 = vunpack.c.h.bf16 %v478_v50  ;;  %v471_v63 = vunpack.c.l.bf16 %v479_v59 }
  0x20   : > { %v280_v43 = vadd.f32 %v631_v6, %v257_v39  ;;  %v258_v44 = vmul.f32 %v460_v40, %v625_v1  ;;  %v259_v48 = vmul.f32 %v463_v45, %v625_v1  ;;  %v260_v53 = vmul.f32 %v464_v49, %v625_v1 }
  0x21   : > { %v261_v57 = vmul.f32 %v467_v54, %v625_v1  ;;  %v262_v62 = vmul.f32 %v468_v58, %v625_v1  ;;  %v263_v3 = vmul.f32 %v471_v63, %v625_v1  ;;  %v472_v4 = vunpack.c.h.bf16 %v479_v59 }
  0x22   : > { %305 = vxpose.xlu0.b32.cont [2/16] (narrow) %v289_v15, 8  ;;  %v296_v46 = vmax.f32 %v280_v43, 0.0  ;;  %v281_v47 = vadd.f32 %v631_v6, %v258_v44  ;;  %v282_v52 = vadd.f32 %v631_v6, %v259_v48  ;;  %v283_v56 = vadd.f32 %v631_v6, %v260_v53 }
  0x23   : > { %v284_v61 = vadd.f32 %v631_v6, %v261_v57  ;;  %v285_v2 = vadd.f32 %v631_v6, %v262_v62  ;;  %v286_v7 = vadd.f32 %v631_v6, %v263_v3  ;;  %v264_v8 = vmul.f32 %v472_v4, %v625_v1 }
  0x24   : > { %v297_v51 = vmax.f32 %v281_v47, 0.0  ;;  %v298_v55 = vmax.f32 %v282_v52, 0.0  ;;  %v299_v60 = vmax.f32 %v283_v56, 0.0 }
  0x25   : > { %v300_v0 = vmax.f32 %v284_v61, 0.0  ;;  %v301_v5 = vmax.f32 %v285_v2, 0.0  ;;  %v302_v9 = vmax.f32 %v286_v7, 0.0  ;;  %v287_v10 = vadd.f32 %v631_v6, %v264_v8 }
  0x26   : > { %306 = vxpose.xlu0.b32.cont [3/16] (narrow) %v290_v19, 8 }
  0x27   : > { %v303_v11 = vmax.f32 %v287_v10, 0.0 }
  0x2a   : > { %307 = vxpose.xlu0.b32.cont [4/16] (narrow) %v291_v24, 8 }
  0x2e   : > { %308 = vxpose.xlu0.b32.cont [5/16] (narrow) %v292_v28, 8 }
  0x32   : > { %309 = vxpose.xlu0.b32.cont [6/16] (narrow) %v293_v33, 8 }
  0x36   : > { %310 = vxpose.xlu0.b32.cont [7/16] (narrow) %v294_v37, 8 }
  0x3a   : > { %311 = vxpose.xlu0.b32.cont [8/16] (narrow) %v295_v42, 8 }
  0x3e   : > { %312 = vxpose.xlu0.b32.cont [9/16] (narrow) %v296_v46, 8 }
  0x42   : > { %313 = vxpose.xlu0.b32.cont [10/16] (narrow) %v297_v51, 8 }
  0x46   : > { %314 = vxpose.xlu0.b32.cont [11/16] (narrow) %v298_v55, 8 }
  0x4a   : > { %315 = vxpose.xlu0.b32.cont [12/16] (narrow) %v299_v60, 8 }
  0x4e   : > { %316 = vxpose.xlu0.b32.cont [13/16] (narrow) %v300_v0, 8 }
  0x52   : > { %317 = vxpose.xlu0.b32.cont [14/16] (narrow) %v301_v5, 8 }
  0x56   : > { %318 = vxpose.xlu0.b32.cont [15/16] (narrow) %v302_v9, 8 }
  0x5a   : > { %319 = vxpose.xlu0.b32.end [16/16] (narrow) %v303_v11, 8 }
  0x9e   : > { %v320_v12 = vpop.trf.xlu0 }
  0x9f   : > { %336 = vst [vmem:[%s209_s9] sm:$0xff] %v320_v12 }
  0xa0 PF: > { %s13_s16 = sadd.s32 1, %s558_s16   ;;  %s696_s12 = smov %s550_s14 }
  0xa1   : > { %p10_p8 = scmp.ge.s32.totalorder %s13_s16, 6   ;;  %s697_s13 = smov %s554_s15 }
  0xa2   : > { %s698_s14 = smov %s701_s17  ;;  %s699_s15 = smov %s705_s18 }
  0xa3   :  { %12 = sbr.rel (!%p10_p8) target bundleno = 3 (0x3), region = 62 }

// kernel: double_conv.3
= control target key start
LH: loop header
LB: loop body
LE: loop exit
PB: predicated region body
PF: predicated region fallthrough
CT: control target
= control target key end

     0   :  { %s2071_s21 = smov 0   ;;  %s2073_s22 = smov 0   ;;  %s2526_s0 = inlined_call_operand.vmem [shape: bf16[2,16,16,4], index: 0, kind: input, shape index: {}, may-alias: {0,1,2}]   ;;  %s2527_s1 = inlined_call_operand.vmem [shape: bf16[2,16,16,4], index: 1, kind: input, shape index: {}, may-alias: {0,1,2}]   ;;  %s2528_s2 = inlined_call_operand.vmem [shape: bf16[2,16,16,4], index: 2, kind: input, shape index: {}, may-alias: {0,1,2}]   ;;  %s2529_s3 = inlined_call_operand.vmem [shape: bf16[3,12,8], index: 3, kind: input, shape index: {}]   ;;  %s2530_s4 = inlined_call_operand.vmem [shape: bf16[2,16,16,8], index: 4, kind: output, shape index: {0}]   ;;  %s2531_s5 = inlined_call_operand.vmem [shape: f32[2,2,1,8], index: 5, kind: output, shape index: {1}]   ;;  %s2532_s6 = inlined_call_operand.vmem [shape: f32[2,2,1,8], index: 6, kind: output, shape index: {2}]  }
   0x1   :  { %s2075_s23 = smov 0   ;;  %s2077_s24 = smov 0  }
   0x2   :  { %s2079_s25 = smov 0  }
   0x3 LB: > { %s26_s26 = sadd.s32 1, %s2024_s23  ;;  %s29_s27 = sadd.s32 1, %s2028_s24  ;;  %s2032_s25 = sphi %s2079_s25, %s17_s25   ;;  %s2028_s24 = sphi %s2077_s24, %s2539_s24   ;;  %s2024_s23 = sphi %s2075_s23, %s2538_s23   ;;  %s2020_s22 = sphi %s2073_s22, %s2537_s22   ;;  %s2016_s21 = sphi %s2071_s21, %s2536_s21  }
   0x4   : > { %p27_p0 = scmp.ge.s32.totalorder %s26_s26, 2  ;;  %p1717_p1 = scmp.ge.s32.totalorder %s2032_s25, 1 }
   0x5   : > { %p307_p2 = scmp.lt.s32.totalorder %s2032_s25, 5 }
   0x6   : > { %s2541_s26 = smov (%p27_p0, %s26_s26), 0  ;;  %s2543_s27 = smov (!%p27_p0, %s29_s27), %s2028_s24 }
   0x7   : > { %p308_p3 = pnand %p1717_p1, %p307_p2  ;;  %p31_p4 = scmp.ge.s32.totalorder %s2543_s27, 2 }
   0x8   : > { %s2104_s28 = sshll.u32 (!%p308_p3), %s2016_s21, 3  ;;  %p388_p5 = scmp.lt.s32.totalorder (!%p308_p3), %s2020_s22, 1  ;;  %vm656_vm0 = vcmask (!%p308_p3), 1040384   ;;  %vm657_vm1 = vsmask.f32 (!%p308_p3), 256  ;;  %vm840_vm4 = vcmask (!%p308_p3), 1046528  }
   0x9   : > { %s2545_s27 = smov (%p31_p4, %s2543_s27), 0  ;;  %311 = sbr.rel (%p308_p3) target bundleno = 462 (0x1ce), region = 36 }
   0xa   : > { %p390_p6 = scmp.lt.s32.totalorder (!%p308_p3), %s2104_s28, 15  ;;  %s1723_s7 = sadd.s32 (!%p308_p3), 4294967295, %s2104_s28  ;;  %vm2132_vm2 = vmand (!%p308_p3), %vm656_vm0, %vm657_vm1  ;;  %vm679_vm3 = vsmask.f32 (!%p308_p3), 7424  ;;  %vm960_vm5 = vcmask (!%p308_p3), 1045504   ;;  %vm912_vm6 = vcmask (!%p308_p3), 64512  }
   0xb   : > { %p400_p7 = scmp.gt.s32.totalorder (!%p308_p3), %s1723_s7, 0  ;;  %p1724_p8 = scmp.lt.s32.totalorder (!%p308_p3), %s1723_s7, 15  ;;  %vm891_vm7 = vcmask (!%p308_p3), 31744   ;;  %vm943_vm8 = vcmask (!%p308_p3), 97280   ;;  %vm1358_vm9 = vcmask (!%p308_p3), 60416   ;;  %vm1428_vm10 = vcmask (!%p308_p3), 57344  }
   0xc   : > { %p478_p9 = scmp.gt.s32.totalorder (!%p308_p3), %s2016_s21, 0  ;;  %p445_p12 = scmp.lt.s32.totalorder (!%p308_p3), %s2016_s21, 1 }
  0x10   : > { %s2547_s22 = smov (!%p388_p5, %s2020_s22), 1  ;;  %s2549_s7 = smov (!%p400_p7, %s1723_s7), 0 }
  0x11   : > { %s391_s29 = scalar_select %p390_p6, %s2104_s28, 15 }
  0x12   : > { %s2111_s30 = sshll.u32 %s2547_s22, 5  ;;  %s2551_s7 = smov (!%p1724_p8, %s2549_s7), 15 }
  0x13   : > { %s1719_s8 = sshll.u32 %s391_s29, 1  ;;  %s1729_s16 = sshll.u32 %s2551_s7, 1 }
  0x14   : > { %s2115_s9 = sadd.s32 %s2111_s30, %s1719_s8  ;;  %s408_s17 = sadd.s32 %s1729_s16, %s2111_s30 }
  0x15   : > { %s1721_s10 = sshll.u32 %s2115_s9, 2  ;;  %s1731_s19 = sshll.u32 %s408_s17, 2 }
  0x16   : > { %s2124_s13 = scalar_lea.vmem %s2526_s0, %s1721_s10  ;;  %s416_s8 = sadd.s32 8, %s2104_s28 }
  0x17   : > { %v1983_v0 = vld [vmem:[%s2124_s13 + $0x8] sm:$0xff]   ;;  %s479_s14 = scalar_select %p478_p9, 1, 0  ;;  %v1984_v3 = vld [vmem:[%s2124_s13] sm:$0xff]   ;;  %v1985_v4 = vld [vmem:[%s2124_s13 + $0x18] sm:$0xff]  }
  0x18   : > { %v581_v1 = vshrl.u32 %v1983_v0, 16  ;;  %v584_v2 = vshll.u32 %v1983_v0, 16  ;;  %v574_v6 = vshrl.u32 %v1984_v3, 16  ;;  %v577_v7 = vshll.u32 %v1984_v3, 16  ;;  %v1986_v16 = vld [vmem:[%s2124_s13 + $0x10] sm:$0xff]   ;;  %p2173_p11 = scmp.lt.s32.totalorder %s416_s8, 15 }
  0x19   : > { %s2128_s15 = scvt.s32.f32 %s479_s14  ;;  %v595_v15 = vshrl.u32 %v1985_v4, 16  ;;  %s410_s14 = scalar_lea.vmem %s2527_s1, %s1731_s19  ;;  %v598_v22 = vshll.u32 %v1985_v4, 16  ;;  %v588_v28 = vshrl.u32 %v1986_v16, 16  ;;  %v591_v39 = vshll.u32 %v1986_v16, 16  ;;  %v1987_v40 = vld [vmem:[%s2124_s13 + $0x28] sm:$0xff]   ;;  %v1988_v46 = vld [vmem:[%s2124_s13 + $0x20] sm:$0xff]  }
  0x1a   : > { %v583_v5 = vrot.slane %v581_v1, 7  ;;  %v576_v11 = vrot.slane %v574_v6, 7  ;;  %v474_v32 = vld [vmem:[%s410_s14] sm:$0xf]  ;;  %v475_v33 = vld [vmem:[%s410_s14 + $0x4] sm:$0xf] }
  0x1b   : > { %p482_p10 = scmp.ne.f32.partialorder %s2128_s15, %s2128_s15  ;;  %s483_s18 = sshrl.u32 %s2128_s15, 16  ;;  %v597_v27 = vrot.slane %v595_v15, 7  ;;  %v590_v38 = vrot.slane %v588_v28, 7  ;;  %v609_v52 = vshrl.u32 %v1987_v40, 16  ;;  %v612_v58 = vshll.u32 %v1987_v40, 16  ;;  %v1989_v4 = vld [vmem:[%s2124_s13 + $0x38] sm:$0xff]  }
  0x1c   : > { %v586_v9 = vor.u32 %v584_v2, %v583_v5  ;;  %v2139_v10 = vsel %vm2132_vm2, %v583_v5, 0  ;;  %s484_s20 = sand.u32 1, %s483_s18  ;;  %v579_v14 = vor.u32 %v577_v7, %v576_v11  ;;  %v2155_v19 = vsel %vm2132_vm2, %v576_v11, 0  ;;  %s2555_s8 = smov (!%p2173_p11, %s416_s8), 15  ;;  %v1990_v28 = vld [vmem:[%s2124_s13 + $0x30] sm:$0xff]  }
  0x1d   : > { %v712_v12 = vshll.u32 %v2139_v10, 16  ;;  %s485_s29 = sadd.s32 32767, %s484_s20  ;;  %v700_v21 = vshll.u32 %v2155_v19, 16  ;;  %s2034_s20 = smov 4   ;;  %v600_v37 = vor.u32 %v598_v22, %v597_v27  ;;  %v848_v45 = vrot.slane %v2139_v10, 1 }
  0x1e   : > { %v2147_v13 = vsel %vm2132_vm2, 0, %v586_v9  ;;  %s486_s7 = sadd.s32 %s485_s29, %s2128_s15  ;;  %v2163_v20 = vsel %vm2132_vm2, 0, %v579_v14  ;;  %s2557_s8 = smov (!%p2173_p11, %s2555_s8), 15  ;;  %v845_v49 = vrot.slane %v2155_v19, 1  ;;  %v593_v51 = vor.u32 %v591_v39, %v590_v38 }
  0x1f   : > { %v705_v17 = vshrl.u32 %v2147_v13, 16  ;;  %v707_v18 = vshll.u32 %v2147_v13, 16  ;;  %s487_s16 = sand.u32 4294901760, %s486_s7  ;;  %v714_v24 = vrot.slane %v712_v12, 1  ;;  %v693_v25 = vshrl.u32 %v2163_v20, 16  ;;  %s2209_s7 = sshll.u32 %s2557_s8, 1 }
  0x20   : > { %s2553_s16 = smov (%p482_p10, %s487_s16), 2143289344  ;;  %v695_v26 = vshll.u32 %v2163_v20, 16  ;;  %v702_v31 = vrot.slane %v700_v21, 1  ;;  %v847_v44 = vrot.slane %v2147_v13, 1  ;;  %v844_v48 = vrot.slane %v2163_v20, 1  ;;  %s2561_s21 = smov (!%p445_p12, %s2016_s21), 1 }
  0x21   : > { %v709_v23 = vrot.slane %v707_v18, 1  ;;  %s490_s17 = sshrl.u32 %s2553_s16, 16  ;;  %v2200_v50 = vsel %vm2132_vm2, 0, %v600_v37  ;;  %v2204_v55 = vsel %vm2132_vm2, %v597_v27, 0  ;;  %v611_v57 = vrot.slane %v609_v52, 7  ;;  %s425_s16 = sadd.s32 %s2209_s7, %s2111_s30 }
  0x22   : > { %v697_v30 = vrot.slane %v695_v26, 1  ;;  %s491_s15 = sshll.u32 %s490_s17, 16  ;;  %v2207_v56 = vsel %vm840_vm4, %v847_v44, %v848_v45  ;;  %v602_v59 = vshrl.u32 %v1988_v46, 16  ;;  %v2213_v61 = vsel %vm840_vm4, %v844_v48, %v845_v49  ;;  %s1738_s18 = sshll.u32 %s425_s16, 2 }
  0x23   : > { %v710_v29 = vor.u32 %v709_v23, %v705_v17  ;;  %s492_s19 = sor.u32 %s491_s15, %s490_s17  ;;  %v731_v62 = vshll.u32 %v2200_v50, 16  ;;  %v605_v63 = vshll.u32 %v1988_v46, 16  ;;  %v736_v0 = vshll.u32 %v2204_v55, 16  ;;  %s1743_s9 = sshll.u32 %s2547_s22, 1 }
  0x24   : > { %v698_v35 = vor.u32 %v697_v30, %v693_v25  ;;  %v493_v36 = vstv %s492_s19  ;;  %s498_s29 = scalar_select %p445_p12, 1, 0  ;;  %v2221_v1 = vsel %vm2132_vm2, 0, %v593_v51  ;;  %v614_v2 = vor.u32 %v612_v58, %v611_v57 }
  0x25   : > { %v715_v34 = vsel %vm679_vm3, %v710_v29, %v714_v24  ;;  %v495_v41 = vmul.bf16 %v493_v36, %v474_v32  ;;  %v496_v42 = vmul.bf16 %v493_v36, %v475_v33  ;;  %v604_v3 = vrot.slane %v602_v59, 7  ;;  %s2035_s19 = smov 8  }
  0x26   : > { %804 = vrot.lane.b32.xlu1 %v715_v34, %s2034_s20  ;;  %v703_v43 = vsel %vm679_vm3, %v698_v35, %v702_v31  ;;  %s2196_s28 = scvt.s32.f32 %s498_s29  ;;  %v729_v7 = vshrl.u32 %v2200_v50, 16  ;;  %v854_v9 = vrot.slane %v2204_v55, 1  ;;  %v2231_v12 = vsel %vm2132_vm2, %v590_v38, 0  ;;  %v1991_v55 = vld [vmem:[%s2529_s3 + $0x8] sm:$0x3f]  }
  0x27   : > { %802 = vrot.lane.b32.xlu0 %v703_v43, %s2034_s20  ;;  %v1745_v47 = vcombine.low %v495_v41, %v496_v42  ;;  %v2235_v14 = vsel %vm2132_vm2, 0, %v614_v2  ;;  %v733_v16 = vrot.slane %v731_v62, 1  ;;  %v719_v17 = vshll.u32 %v2221_v1, 16  ;;  %1937 = vmatprep.subr.msk.bf16.mxu1 %vm960_vm5, %v1991_v55 }
  0x28   : > { %s502_s11 = sshrl.u32 %s2196_s28, 16  ;;  %p501_p13 = scmp.ne.f32.partialorder %s2196_s28, %s2196_s28  ;;  %v607_v18 = vor.u32 %v605_v63, %v604_v3  ;;  %v623_v23 = vshrl.u32 %v1989_v4, 16  ;;  %v738_v24 = vrot.slane %v736_v0, 1  ;;  %v724_v25 = vshll.u32 %v2231_v12, 16 }
  0x29   : > { %v567_v53 = vshrl.u32 %v1745_v47, 16  ;;  %v570_v54 = vshll.u32 %v1745_v47, 16  ;;  %s503_s12 = sand.u32 1, %s502_s11  ;;  %v2255_v26 = vsel %vm2132_vm2, %v611_v57, 0  ;;  %v755_v27 = vshll.u32 %v2235_v14, 16 }
  0x2a   : > { %s504_s8 = sadd.s32 32767, %s503_s12  ;;  %v626_v32 = vshll.u32 %v1989_v4, 16  ;;  %v734_v33 = vor.u32 %v733_v16, %v729_v7  ;;  %v717_v34 = vshrl.u32 %v2221_v1, 16  ;;  %v853_v35 = vrot.slane %v2200_v50, 1 }
  0x2b   : > { %v569_v60 = vrot.slane %v567_v53, 7  ;;  %s505_s14 = sadd.s32 %s504_s8, %s2196_s28  ;;  %v2266_v36 = vsel %vm2132_vm2, 0, %v607_v18  ;;  %v721_v38 = vrot.slane %v719_v17, 1  ;;  %v760_v39 = vshll.u32 %v2255_v26, 16  ;;  %s427_s28 = scalar_lea.vmem %s2528_s2, %s1738_s18  ;;  %v1993_v18 = vld [vmem:[%s2529_s3 + $0x10] sm:$0x3f]  }
  0x2c   : > { %s506_s17 = sand.u32 4294901760, %s505_s14  ;;  %v625_v40 = vrot.slane %v623_v23, 7  ;;  %v851_v41 = vrot.slane %v2231_v12, 1  ;;  %v753_v42 = vshrl.u32 %v2235_v14, 16  ;;  %v757_v43 = vrot.slane %v755_v27, 1  ;;  %s2435_s18 = scalar_lea.vmem %s2530_s4, %s1721_s10 }
  0x2d   : > { %v572_v5 = vor.u32 %v570_v54, %v569_v60  ;;  %v669_v6 = vsel %vm2132_vm2, %v569_v60, 0  ;;  %s2559_s17 = smov (%p501_p13, %s506_s17), 2143289344  ;;  %v616_v44 = vshrl.u32 %v1990_v28, 16  ;;  %v2277_v46 = vsel %vm2132_vm2, %v604_v3, 0  ;;  %v476_v59 = vld [vmem:[%s427_s28] sm:$0xf]  ;;  %s448_s10 = sadd.s32 %s1743_s9, %s2561_s21 }
  0x2e   : > { %v842_v10 = vrot.slane %v669_v6, 1  ;;  %v688_v11 = vshll.u32 %v669_v6, 16  ;;  %s509_s30 = sshrl.u32 %s2559_s17, 16  ;;  %v743_v47 = vshll.u32 %v2266_v36, 16  ;;  %v628_v48 = vor.u32 %v626_v32, %v625_v40  ;;  %v477_v60 = vld [vmem:[%s427_s28 + $0x4] sm:$0xf]  ;;  %s449_s13 = scalar_lea.vmem %s2531_s5, %s448_s10 }
  0x2f   : > { %v2241_v15 = vsel %vm2132_vm2, 0, %v572_v5  ;;  %s510_s15 = sshll.u32 %s509_s30, 16  ;;  %v726_v49 = vrot.slane %v724_v25, 1  ;;  %v850_v51 = vrot.slane %v2221_v1, 1  ;;  %v618_v52 = vrot.slane %v616_v44, 7 }
  0x30   : > { %v841_v19 = vrot.slane %v2241_v15, 1  ;;  %v681_v21 = vshrl.u32 %v2241_v15, 16  ;;  %v683_v22 = vshll.u32 %v2241_v15, 16  ;;  %v690_v31 = vrot.slane %v688_v11, 1  ;;  %s511_s7 = sor.u32 %s510_s15, %s509_s30 }
  0x31   : > { %v619_v53 = vshll.u32 %v1990_v28, 16  ;;  %v739_v54 = vsel %vm679_vm3, %v734_v33, %v738_v24  ;;  %v722_v57 = vor.u32 %v721_v38, %v717_v34  ;;  %v762_v58 = vrot.slane %v760_v39, 1 }
  0x32   : > { %v843_v29 = vsel %vm840_vm4, %v841_v19, %v842_v10  ;;  %v685_v30 = vrot.slane %v683_v22, 1  ;;  %v512_v62 = vstv %s511_s7  ;;  %v758_v63 = vor.u32 %v757_v43, %v753_v42  ;;  %s456_s7 = scalar_lea.vmem %s2532_s6, %s448_s10 }
  0x33   : > { %871 = vrot.lane.b32.xlu1 %v843_v29, %s2035_s19  ;;  %v748_v0 = vshll.u32 %v2277_v46, 16  ;;  %v621_v2 = vor.u32 %v619_v53, %v618_v52  ;;  %v855_v3 = vsel %vm840_vm4, %v853_v35, %v854_v9  ;;  %v741_v4 = vshrl.u32 %v2266_v36, 16  ;;  %v1992_v9 = vld [vmem:[%s2529_s3] sm:$0x3f]  }
  0x34   : > { %v686_v37 = vor.u32 %v685_v30, %v681_v21  ;;  %v745_v5 = vrot.slane %v743_v47, 1  ;;  %v852_v6 = vsel %vm840_vm4, %v850_v51, %v851_v41  ;;  %v2300_v7 = vsel %vm2132_vm2, %v625_v40, 0  ;;  %1938 = vmatprep.subr.msk.bf16.mxu0 %vm960_vm5, %v1992_v9 }
  0x35   : > { %v514_v10 = vmul.bf16 %v512_v62, %v476_v59  ;;  %v515_v11 = vmul.bf16 %v512_v62, %v477_v60  ;;  %v859_v12 = vrot.slane %v2235_v14, 1  ;;  %v2313_v17 = vsel %vm2132_vm2, 0, %v621_v2 }
  0x36   : > { %v691_v45 = vsel %vm679_vm3, %v686_v37, %v690_v31  ;;  %v763_v19 = vsel %vm679_vm3, %v758_v63, %v762_v58  ;;  %v750_v21 = vrot.slane %v748_v0, 1  ;;  %v860_v22 = vrot.slane %v2255_v26, 1 }
  0x37   : > { %875 = vrot.lane.b32.xlu1 %v2207_v56, %s2035_s19  ;;  %800 = vrot.lane.b32.xlu0 %v691_v45, %s2034_s20  ;;  %v2288_v56 = vsel %vm2132_vm2, 0, %v628_v48  ;;  %v1754_v23 = vcombine.low %v514_v10, %v515_v11  ;;  %v746_v24 = vor.u32 %v745_v5, %v741_v4  ;;  %v784_v27 = vshll.u32 %v2300_v7, 16 }
  0x38   : > { %v779_v16 = vshll.u32 %v2288_v56, 16  ;;  %v777_v25 = vshrl.u32 %v2288_v56, 16  ;;  %v676_v28 = vsel %vm2132_vm2, %v618_v52, 0  ;;  %v767_v29 = vshll.u32 %v2313_v17, 16 }
  0x39   : > { %v630_v30 = vshrl.u32 %v1754_v23, 16  ;;  %v633_v31 = vshll.u32 %v1754_v23, 16  ;;  %v962_v26 = vsel %vm960_vm5, %v1991_v55, 0  ;;  %v2331_v33 = vsel %vm960_vm5, %v1992_v9, 0 }
  0x3a   : > { %v781_v32 = vrot.slane %v779_v16, 1  ;;  %v2334_v34 = vsel %vm960_vm5, %v1993_v18, 0  ;;  %1850 = vmatpush3.bf16.msra.mxu1 %v962_v26  ;;  %1868 = vmatpush3.bf16.msra.mxu0 %v2331_v33  ;;  %v856_v37 = vrot.slane %v2266_v36, 1  ;;  %v857_v38 = vrot.slane %v2277_v46, 1 }
  0x3b   : > { %873 = vrot.lane.b32.xlu0 %v2213_v61, %s2035_s19  ;;  %808 = vrot.lane.b32.xlu1 %v739_v54, %s2034_s20  ;;  %v727_v61 = vsel %vm679_vm3, %v722_v57, %v726_v49  ;;  %v632_v35 = vrot.slane %v630_v30, 7  ;;  %v765_v39 = vshrl.u32 %v2313_v17, 16  ;;  %v769_v40 = vrot.slane %v767_v29, 1 }
  0x3c   : > { %1939 = vmatprep.subr.msk.bf16.mxu1 %vm960_vm5, %v1992_v9  ;;  %1940 = vmatprep.subr.msk.bf16.mxu0 %vm960_vm5, %v1993_v18  ;;  %v772_v41 = vshll.u32 %v676_v28, 16  ;;  %v751_v43 = vsel %vm679_vm3, %v746_v24, %v750_v21  ;;  %v861_v44 = vsel %vm840_vm4, %v859_v12, %v860_v22  ;;  %v782_v45 = vor.u32 %v781_v32, %v777_v25 }
  0x3d   : > { %v635_v42 = vor.u32 %v633_v31, %v632_v35  ;;  %v786_v47 = vrot.slane %v784_v27, 1  ;;  %v770_v48 = vor.u32 %v769_v40, %v765_v39  ;;  %v865_v51 = vrot.slane %v2288_v56, 1 }
  0x3e   : > { %v774_v49 = vrot.slane %v772_v41, 1  ;;  %v866_v52 = vrot.slane %v2300_v7, 1  ;;  %v858_v53 = vsel %vm840_vm4, %v856_v37, %v857_v38  ;;  %v678_v57 = vsel %vm2132_vm2, %v632_v35, 0 }
  0x3f   : > { %806 = vrot.lane.b32.xlu0 %v727_v61, %s2034_s20  ;;  %879 = vrot.lane.b32.xlu1 %v855_v3, %s2035_s19  ;;  %v2348_v46 = vsel %vm2132_vm2, 0, %v635_v42  ;;  %v787_v54 = vsel %vm679_vm3, %v782_v45, %v786_v47  ;;  %v863_v59 = vrot.slane %v676_v28, 1  ;;  %v862_v63 = vrot.slane %v2313_v17, 1 }
  0x40   : > { %v791_v58 = vshll.u32 %v2348_v46, 16  ;;  %v775_v60 = vsel %vm679_vm3, %v770_v48, %v774_v49  ;;  %v867_v62 = vsel %vm840_vm4, %v865_v51, %v866_v52  ;;  %v796_v0 = vshll.u32 %v678_v57, 16 }
  0x41   : > { %v789_v2 = vshrl.u32 %v2348_v46, 16  ;;  %v868_v8 = vrot.slane %v2348_v46, 1  ;;  %v869_v4 = vrot.slane %v678_v57, 1  ;;  %v864_v5 = vsel %vm840_vm4, %v862_v63, %v863_v59 }
  0x42   : > { %v793_v3 = vrot.slane %v791_v58, 1  ;;  %v798_v7 = vrot.slane %v796_v0, 1 }
  0x43   : > { %877 = vrot.lane.b32.xlu0 %v852_v6, %s2035_s19  ;;  %812 = vrot.lane.b32.xlu1 %v763_v19, %s2034_s20  ;;  %v870_v10 = vsel %vm840_vm4, %v868_v8, %v869_v4 }
  0x44   : > { %v794_v6 = vor.u32 %v793_v3, %v789_v2 }
  0x46   : > { %v799_v11 = vsel %vm679_vm3, %v794_v6, %v798_v7 }
  0x47   : > { %810 = vrot.lane.b32.xlu0 %v751_v43, %s2034_s20  ;;  %883 = vrot.lane.b32.xlu1 %v861_v44, %s2035_s19 }
  0x4b   : > { %881 = vrot.lane.b32.xlu0 %v858_v53, %s2035_s19  ;;  %816 = vrot.lane.b32.xlu1 %v787_v54, %s2034_s20 }
  0x4f   : > { %814 = vrot.lane.b32.xlu0 %v775_v60, %s2034_s20  ;;  %887 = vrot.lane.b32.xlu1 %v867_v62, %s2035_s19 }
  0x53   : > { %885 = vrot.lane.b32.xlu0 %v864_v5, %s2035_s19  ;;  %889 = vrot.lane.b32.xlu1 %v870_v10, %s2035_s19 }
  0x57   : > { %818 = vrot.lane.b32.xlu0 %v799_v11, %s2034_s20 }
  0x98   : > { %v805_v55 = vpop.permute.xlu1 %804 }
  0x99   : > { %v803_v9 = vpop.permute.xlu0 %802  ;;  %v897_v24 = vsel %vm891_vm7, %v2147_v13, %v805_v55 }
  0x9a   : > { %v895_v21 = vsel %vm891_vm7, %v2163_v20, %v803_v9 }
  0xa5   : > { %v872_v61 = vpop.permute.xlu1 %871 }
  0xa9   : > { %v876_v12 = vpop.permute.xlu1 %875  ;;  %v801_v16 = vpop.permute.xlu0 %800 }
  0xaa   : > { %v893_v18 = vsel %vm891_vm7, %v2241_v15, %v801_v16  ;;  %v918_v27 = vsel %vm912_vm6, %v897_v24, %v876_v12 }
  0xab   : > { %v914_v19 = vsel %vm912_vm6, %v893_v18, %v872_v61 }
  0xac   : > { %1869 = vmatprep.mubr.msk.bf16.mxu0 %vm943_vm8, %v914_v19 }
  0xad   : > { %v874_v22 = vpop.permute.xlu0 %873  ;;  %v809_v23 = vpop.permute.xlu1 %808 }
  0xae   : > { %v916_v25 = vsel %vm912_vm6, %v895_v21, %v874_v22  ;;  %v901_v13 = vsel %vm891_vm7, %v2200_v50, %v809_v23 }
  0xaf   : > { %1851 = vmatprep.mubr.msk.bf16.mxu1 %vm943_vm8, %v916_v25  ;;  %1870 = vmatmul.mubr.msk.bf16.vlgmr.msra.gmra.mrb[0].mxu0 %vm943_vm8, %v916_v25 }
  0xb0   : > { %1852 = vmatmul.mubr.msk.bf16.vlgmr.msra.gmra.mrb[0].mxu1 %vm943_vm8, %v918_v27  ;;  %1873 = vmatprep.mubr.msk.bf16.mxu0 %vm943_vm8, %v918_v27 }
  0xb1   : > { %1904 = vmatpush3.bf16.msra.mxu1 %v2331_v33  ;;  %1886 = vmatpush3.bf16.msra.mxu0 %v2334_v34  ;;  %v807_v20 = vpop.permute.xlu0 %806  ;;  %v880_v15 = vpop.permute.xlu1 %879 }
  0xb2   : > { %v899_v28 = vsel %vm891_vm7, %v2221_v1, %v807_v20  ;;  %v922_v32 = vsel %vm912_vm6, %v901_v13, %v880_v15 }
  0xb5   : > { %v878_v29 = vpop.permute.xlu0 %877  ;;  %v813_v30 = vpop.permute.xlu1 %812 }
  0xb6   : > { %v920_v31 = vsel %vm912_vm6, %v899_v28, %v878_v29  ;;  %v905_v50 = vsel %vm891_vm7, %v2235_v14, %v813_v30 }
  0xb7   : > { %1855 = vmatprep.mubr.msk.bf16.mxu1 %vm943_vm8, %v920_v31  ;;  %1874 = vmatmul.mubr.msk.bf16.gmra.mrb[4].mxu0 %vm943_vm8, %v920_v31 }
  0xb8   : > { %1856 = vmatmul.mubr.msk.bf16.gmra.mrb[4].mxu1 %vm943_vm8, %v922_v32  ;;  %1887 = vmatprep.mubr.msk.bf16.mxu0 %vm943_vm8, %v918_v27 }
  0xb9   : > { %v811_v26 = vpop.permute.xlu0 %810  ;;  %v884_v33 = vpop.permute.xlu1 %883 }
  0xba   : > { %v903_v1 = vsel %vm891_vm7, %v2266_v36, %v811_v26  ;;  %v926_v38 = vsel %vm912_vm6, %v905_v50, %v884_v33 }
  0xbd   : > { %v882_v34 = vpop.permute.xlu0 %881  ;;  %v817_v37 = vpop.permute.xlu1 %816 }
  0xbe   : > { %v924_v35 = vsel %vm912_vm6, %v903_v1, %v882_v34  ;;  %v909_v14 = vsel %vm891_vm7, %v2288_v56, %v817_v37 }
  0xbf   : > { %1859 = vmatprep.mubr.msk.bf16.mxu1 %vm943_vm8, %v924_v35  ;;  %1888 = vmatmul.mubr.msk.bf16.vlgmr.msra.gmra.mrb[0].mxu0 %vm943_vm8, %v920_v31 }
  0xc0   : > { %1860 = vmatmul.mubr.msk.bf16.gmra.mrb[8].mxu1 %vm943_vm8, %v926_v38  ;;  %1891 = vmatprep.mubr.msk.bf16.mxu0 %vm943_vm8, %v922_v32 }
  0xc1   : > { %v815_v39 = vpop.permute.xlu0 %814  ;;  %v888_v40 = vpop.permute.xlu1 %887 }
  0xc2   : > { %v907_v36 = vsel %vm891_vm7, %v2313_v17, %v815_v39  ;;  %v930_v43 = vsel %vm912_vm6, %v909_v14, %v888_v40 }
  0xc5   : > { %v886_v41 = vpop.permute.xlu0 %885  ;;  %v890_v44 = vpop.permute.xlu1 %889 }
  0xc6   : > { %v928_v42 = vsel %vm912_vm6, %v907_v36, %v886_v41 }
  0xc7   : > { %1863 = vmatprep.mubr.msk.bf16.mxu1 %vm943_vm8, %v928_v42  ;;  %1892 = vmatmul.mubr.msk.bf16.gmra.mrb[4].mxu0 %vm943_vm8, %v924_v35 }
  0xc8   : > { %1864 = vmatmul.mubr.msk.bf16.gmra.mrb[12].mxu1 %vm943_vm8, %v930_v43  ;;  %1895 = vmatprep.mubr.msk.bf16.mxu0 %vm943_vm8, %v926_v38 }
  0xc9   : > { %1877 = vmatprep.mubr.msk.bf16.mxu1 %vm943_vm8, %v922_v32  ;;  %v819_v56 = vpop.permute.xlu0 %818 }
  0xca   : > { %v911_v17 = vsel %vm891_vm7, %v2348_v46, %v819_v56 }
  0xcb   : > { %v932_v45 = vsel %vm912_vm6, %v911_v17, %v890_v44 }
  0xcf   : > { %1896 = vmatmul.mubr.msk.bf16.gmra.mrb[8].mxu0 %vm943_vm8, %v928_v42 }
  0xd0   : > { %1878 = vmatmul.mubr.msk.bf16.vlgmr.msra.gmra.mrb[8].mxu1 %vm943_vm8, %v924_v35  ;;  %1899 = vmatprep.mubr.msk.bf16.mxu0 %vm943_vm8, %v930_v43 }
  0xd1   : > { %1881 = vmatprep.mubr.msk.bf16.mxu1 %vm943_vm8, %v926_v38 }
  0xd7   : > { %1900 = vmatmul.mubr.msk.bf16.gmra.mrb[12].mxu0 %vm943_vm8, %v932_v45 }
  0xd8   : > { %1882 = vmatmul.mubr.msk.bf16.gmra.mrb[12].mxu1 %vm943_vm8, %v928_v42 }
 0x183   : > { %v1853_v47 = vpop.f32.mrb[0].mxu1 }
 0x184   : > { %v998_v48 = vpop.f32.mrb[1].mxu1 }
 0x185   : > { %v1854_v49 = vpop.f32.mrb[2].mxu1 }
 0x186   : > { %v1001_v51 = vpop.f32.mrb[3].mxu1 }
 0x18b   : > { %v1857_v52 = vpop.f32.mrb[4].mxu1 }
 0x18c   : > { %v1014_v53 = vpop.f32.mrb[5].mxu1 }
 0x18d   : > { %v1858_v54 = vpop.f32.mrb[6].mxu1 }
 0x18e   : > { %v1017_v57 = vpop.f32.mrb[7].mxu1 }
 0x192   : > { %v1889_v58 = vpop.f32.mrb[0].mxu0 }
 0x193   : > { %v1905_v59 = vadd.f32 %v1889_v58, %v1853_v47  ;;  %v1215_v60 = vpop.f32.mrb[1].mxu0 }
 0x194   : > { %v1906_v46 = vadd.f32 %v1215_v60, %v998_v48  ;;  %v1890_v62 = vpop.f32.mrb[2].mxu0 }
 0x195   : > { %v1808_v63 = vpack.c.bf16 %v1905_v59, %v1905_v59  ;;  %v1907_v0 = vadd.f32 %v1890_v62, %v1854_v49  ;;  %v1218_v2 = vpop.f32.mrb[3].mxu0 }
 0x196   : > { %v1806_v3 = vpack.c.bf16 %v1906_v46, %v1906_v46  ;;  %v1908_v8 = vadd.f32 %v1218_v2, %v1001_v51 }
 0x197   : > { %1361 = vst.msk [vmem:[%s2435_s18 + $0x8] sm:$0xf] %vm1358_vm9, %v1808_v63  ;;  %v1295_v4 = vpack.c.bf16 %v1907_v0, %v1905_v59  ;;  %v1809_v5 = vpack.c.bf16 %v1907_v0, %v1907_v0 }
 0x198   : > { %1359 = vst.msk [vmem:[%s2435_s18] sm:$0xf] %vm1358_vm9, %v1806_v3  ;;  %v1294_v6 = vpack.c.bf16 %v1908_v8, %v1906_v46  ;;  %v1807_v7 = vpack.c.bf16 %v1908_v8, %v1908_v8 }
 0x199   : > { %1362 = vst.msk [vmem:[%s2435_s18 + $0xc] sm:$0xf] %vm1358_vm9, %v1809_v5  ;;  %v1377_v10 = vunpack.c.l.bf16 %v1295_v4  ;;  %v1378_v11 = vunpack.c.h.bf16 %v1295_v4 }
 0x19a   : > { %1360 = vst.msk [vmem:[%s2435_s18 + $0x4] sm:$0xf] %vm1358_vm9, %v1807_v7  ;;  %v1375_v55 = vunpack.c.l.bf16 %v1294_v6  ;;  %v1376_v9 = vunpack.c.h.bf16 %v1294_v6  ;;  %v1893_v61 = vpop.f32.mrb[4].mxu0 }
 0x19b   : > { %v1394_v12 = vsel %vm912_vm6, %v1377_v10, 0.0  ;;  %v1432_v16 = vmul.f32 %v1377_v10, %v1377_v10  ;;  %v1231_v18 = vpop.f32.mrb[5].mxu0  ;;  %v1396_v25 = vsel %vm912_vm6, %v1378_v11, 0.0  ;;  %v1433_v27 = vmul.f32 %v1378_v11, %v1378_v11 }
 0x19c   : > { %v1391_v19 = vsel %vm912_vm6, %v1375_v55, 0.0  ;;  %v1392_v21 = vsel %vm912_vm6, %v1376_v9, 0.0  ;;  %v1430_v22 = vmul.f32 %v1375_v55, %v1375_v55  ;;  %v1431_v23 = vmul.f32 %v1376_v9, %v1376_v9  ;;  %v1894_v24 = vpop.f32.mrb[6].mxu0 }
 0x19d   : > { %v1393_v20 = vadd.f32 %v1392_v21, %v1391_v19  ;;  %v1909_v15 = vadd.f32 %v1893_v61, %v1857_v52  ;;  %v1234_v13 = vpop.f32.mrb[7].mxu0  ;;  %v1910_v30 = vadd.f32 %v1231_v18, %v1014_v53  ;;  %v1911_v31 = vadd.f32 %v1894_v24, %v1858_v54 }
 0x19e   : > { %v1446_v28 = vsel %vm912_vm6, %v1430_v22, 0.0  ;;  %v1447_v29 = vsel %vm912_vm6, %v1431_v23, 0.0  ;;  %v1912_v50 = vadd.f32 %v1234_v13, %v1017_v57  ;;  %v1449_v1 = vsel %vm912_vm6, %v1432_v16, 0.0 }
 0x19f   : > { %v1395_v32 = vadd.f32 %v1394_v12, %v1393_v20  ;;  %v1448_v26 = vadd.f32 %v1447_v29, %v1446_v28  ;;  %v1812_v33 = vpack.c.bf16 %v1909_v15, %v1909_v15  ;;  %v1810_v34 = vpack.c.bf16 %v1910_v30, %v1910_v30 }
 0x1a0   : > { %v1297_v35 = vpack.c.bf16 %v1911_v31, %v1909_v15  ;;  %v1813_v37 = vpack.c.bf16 %v1911_v31, %v1911_v31  ;;  %v1296_v39 = vpack.c.bf16 %v1912_v50, %v1910_v30  ;;  %v1811_v14 = vpack.c.bf16 %v1912_v50, %v1912_v50 }
 0x1a1   : > { %v1450_v38 = vadd.f32 %v1449_v1, %v1448_v26  ;;  %1365 = vst.msk [vmem:[%s2435_s18 + $0x18] sm:$0xf] %vm1358_vm9, %v1812_v33  ;;  %v1397_v40 = vadd.f32 %v1396_v25, %v1395_v32  ;;  %v1451_v36 = vsel %vm912_vm6, %v1433_v27, 0.0  ;;  %1363 = vst.msk [vmem:[%s2435_s18 + $0x10] sm:$0xf] %vm1358_vm9, %v1810_v34 }
 0x1a2   : > { %1366 = vst.msk [vmem:[%s2435_s18 + $0x1c] sm:$0xf] %vm1358_vm9, %v1813_v37  ;;  %v1381_v41 = vunpack.c.l.bf16 %v1297_v35  ;;  %v1382_v42 = vunpack.c.h.bf16 %v1297_v35  ;;  %v1897_v43 = vpop.f32.mrb[8].mxu0  ;;  %1364 = vst.msk [vmem:[%s2435_s18 + $0x14] sm:$0xf] %vm1358_vm9, %v1811_v14  ;;  %v1379_v56 = vunpack.c.l.bf16 %v1296_v39  ;;  %v1380_v17 = vunpack.c.h.bf16 %v1296_v39 }
 0x1a3   : > { %v1452_v44 = vadd.f32 %v1451_v36, %v1450_v38  ;;  %v1879_v45 = vpop.f32.mrb[8].mxu1  ;;  %v1247_v47 = vpop.f32.mrb[9].mxu0 }
 0x1a4   : > { %v1137_v48 = vpop.f32.mrb[9].mxu1  ;;  %v1898_v49 = vpop.f32.mrb[10].mxu0  ;;  %v1402_v51 = vsel %vm912_vm6, %v1381_v41, 0.0  ;;  %v1398_v52 = vsel %vm912_vm6, %v1379_v56, 0.0  ;;  %v1434_v53 = vmul.f32 %v1379_v56, %v1379_v56  ;;  %v1435_v54 = vmul.f32 %v1380_v17, %v1380_v17 }
 0x1a5   : > { %v1880_v57 = vpop.f32.mrb[10].mxu1  ;;  %v1250_v58 = vpop.f32.mrb[11].mxu0  ;;  %v1436_v59 = vmul.f32 %v1381_v41, %v1381_v41  ;;  %v1437_v60 = vmul.f32 %v1382_v42, %v1382_v42  ;;  %v1399_v46 = vadd.f32 %v1398_v52, %v1397_v40  ;;  %v1913_v62 = vadd.f32 %v1897_v43, %v1879_v45 }
 0x1a6   : > { %v1140_v63 = vpop.f32.mrb[11].mxu1  ;;  %v1400_v0 = vsel %vm912_vm6, %v1380_v17, 0.0  ;;  %v1453_v2 = vsel %vm912_vm6, %v1434_v53, 0.0  ;;  %v1914_v3 = vadd.f32 %v1247_v47, %v1137_v48  ;;  %v1915_v8 = vadd.f32 %v1898_v49, %v1880_v57 }
 0x1a7   : > { %v1401_v4 = vadd.f32 %v1400_v0, %v1399_v46  ;;  %v1454_v5 = vadd.f32 %v1453_v2, %v1452_v44  ;;  %v1816_v6 = vpack.c.bf16 %v1913_v62, %v1913_v62  ;;  %v1916_v7 = vadd.f32 %v1250_v58, %v1140_v63 }
 0x1a8   : > { %v1455_v10 = vsel %vm912_vm6, %v1435_v54, 0.0  ;;  %v1814_v11 = vpack.c.bf16 %v1914_v3, %v1914_v3  ;;  %v1299_v55 = vpack.c.bf16 %v1915_v8, %v1913_v62  ;;  %v1817_v9 = vpack.c.bf16 %v1915_v8, %v1915_v8 }
 0x1a9   : > { %v1403_v61 = vadd.f32 %v1402_v51, %v1401_v4  ;;  %v1456_v12 = vadd.f32 %v1455_v10, %v1454_v5  ;;  %1369 = vst.msk [vmem:[%s2435_s18 + $0x28] sm:$0xf] %vm1358_vm9, %v1816_v6  ;;  %v1298_v16 = vpack.c.bf16 %v1916_v7, %v1914_v3  ;;  %v1815_v18 = vpack.c.bf16 %v1916_v7, %v1916_v7 }
 0x1aa   : > { %v1901_v19 = vpop.f32.mrb[12].mxu0  ;;  %v1404_v21 = vsel %vm912_vm6, %v1382_v42, 0.0  ;;  %v1457_v22 = vsel %vm912_vm6, %v1436_v59, 0.0  ;;  %1367 = vst.msk [vmem:[%s2435_s18 + $0x20] sm:$0xf] %vm1358_vm9, %v1814_v11  ;;  %v1385_v23 = vunpack.c.l.bf16 %v1299_v55  ;;  %v1459_v30 = vsel %vm912_vm6, %v1437_v60, 0.0 }
 0x1ab   : > { %1370 = vst.msk [vmem:[%s2435_s18 + $0x2c] sm:$0xf] %vm1358_vm9, %v1817_v9  ;;  %v1883_v24 = vpop.f32.mrb[12].mxu1  ;;  %v1263_v25 = vpop.f32.mrb[13].mxu0  ;;  %v1458_v27 = vadd.f32 %v1457_v22, %v1456_v12  ;;  %1368 = vst.msk [vmem:[%s2435_s18 + $0x24] sm:$0xf] %vm1358_vm9, %v1815_v18  ;;  %v1383_v20 = vunpack.c.l.bf16 %v1298_v16  ;;  %v1384_v15 = vunpack.c.h.bf16 %v1298_v16  ;;  %v1405_v13 = vadd.f32 %v1404_v21, %v1403_v61 }
 0x1ac   : > { %v1153_v28 = vpop.f32.mrb[13].mxu1  ;;  %v1902_v29 = vpop.f32.mrb[14].mxu0  ;;  %v1386_v26 = vunpack.c.h.bf16 %v1299_v55  ;;  %v1410_v35 = vsel %vm912_vm6, %v1385_v23, 0.0  ;;  %v1440_v37 = vmul.f32 %v1385_v23, %v1385_v23  ;;  %v1917_v36 = vadd.f32 %v1901_v19, %v1883_v24 }
 0x1ad   : > { %v1884_v31 = vpop.f32.mrb[14].mxu1  ;;  %v1266_v32 = vpop.f32.mrb[15].mxu0  ;;  %v1406_v33 = vsel %vm912_vm6, %v1383_v20, 0.0  ;;  %v1438_v50 = vmul.f32 %v1383_v20, %v1383_v20  ;;  %v1439_v1 = vmul.f32 %v1384_v15, %v1384_v15  ;;  %v1460_v39 = vadd.f32 %v1459_v30, %v1458_v27 }
 0x1ae   : > { %v1156_v34 = vpop.f32.mrb[15].mxu1  ;;  %v1407_v38 = vadd.f32 %v1406_v33, %v1405_v13  ;;  %v1408_v14 = vsel %vm912_vm6, %v1384_v15, 0.0  ;;  %v1918_v41 = vadd.f32 %v1263_v25, %v1153_v28  ;;  %v1919_v56 = vadd.f32 %v1902_v29, %v1884_v31 }
 0x1af   : > { %v1461_v40 = vsel %vm912_vm6, %v1438_v50, 0.0  ;;  %v1920_v17 = vadd.f32 %v1266_v32, %v1156_v34  ;;  %v1441_v44 = vmul.f32 %v1386_v26, %v1386_v26  ;;  %v1463_v45 = vsel %vm912_vm6, %v1439_v1, 0.0 }
 0x1b0   : > { %v1409_v42 = vadd.f32 %v1408_v14, %v1407_v38  ;;  %v1462_v43 = vadd.f32 %v1461_v40, %v1460_v39  ;;  %v1820_v47 = vpack.c.bf16 %v1917_v36, %v1917_v36  ;;  %v1818_v48 = vpack.c.bf16 %v1918_v41, %v1918_v41 }
 0x1b1   : > { %v1301_v52 = vpack.c.bf16 %v1919_v56, %v1917_v36  ;;  %v1821_v53 = vpack.c.bf16 %v1919_v56, %v1919_v56  ;;  %v1412_v54 = vsel %vm912_vm6, %v1386_v26, 0.0  ;;  %v1465_v57 = vsel %vm912_vm6, %v1440_v37, 0.0 }
 0x1b2   : > { %v1411_v49 = vadd.f32 %v1410_v35, %v1409_v42  ;;  %v1464_v51 = vadd.f32 %v1463_v45, %v1462_v43  ;;  %1373 = vst.msk [vmem:[%s2435_s18 + $0x38] sm:$0xf] %vm1358_vm9, %v1820_v47  ;;  %1371 = vst.msk [vmem:[%s2435_s18 + $0x30] sm:$0xf] %vm1358_vm9, %v1818_v48  ;;  %v1300_v58 = vpack.c.bf16 %v1920_v17, %v1918_v41  ;;  %v1467_v2 = vsel %vm912_vm6, %v1441_v44, 0.0 }
 0x1b3   : > { %v1819_v59 = vpack.c.bf16 %v1920_v17, %v1920_v17  ;;  %1374 = vst.msk [vmem:[%s2435_s18 + $0x3c] sm:$0xf] %vm1358_vm9, %v1821_v53  ;;  %v1389_v62 = vunpack.c.l.bf16 %v1301_v52  ;;  %v1390_v3 = vunpack.c.h.bf16 %v1301_v52 }
 0x1b4   : > { %v1466_v60 = vadd.f32 %v1465_v57, %v1464_v51  ;;  %v1413_v46 = vadd.f32 %v1412_v54, %v1411_v49  ;;  %v1387_v63 = vunpack.c.l.bf16 %v1300_v58  ;;  %v1388_v0 = vunpack.c.h.bf16 %v1300_v58 }
 0x1b5   : > { %1372 = vst.msk [vmem:[%s2435_s18 + $0x34] sm:$0xf] %vm1358_vm9, %v1819_v59  ;;  %v1444_v10 = vmul.f32 %v1389_v62, %v1389_v62  ;;  %v1418_v12 = vsel %vm912_vm6, %v1389_v62, 0.0  ;;  %v1445_v16 = vmul.f32 %v1390_v3, %v1390_v3  ;;  %v1420_v22 = vsel %vm912_vm6, %v1390_v3, 0.0 }
 0x1b6   : > { %v1414_v8 = vsel %vm912_vm6, %v1387_v63, 0.0  ;;  %v1442_v4 = vmul.f32 %v1387_v63, %v1387_v63  ;;  %v1443_v5 = vmul.f32 %v1388_v0, %v1388_v0  ;;  %v1468_v7 = vadd.f32 %v1467_v2, %v1466_v60 }
 0x1b7   : > { %v1415_v6 = vadd.f32 %v1414_v8, %v1413_v46  ;;  %v1416_v11 = vsel %vm912_vm6, %v1388_v0, 0.0  ;;  %v1473_v23 = vsel %vm912_vm6, %v1444_v10, 0.0  ;;  %v1475_v27 = vsel %vm912_vm6, %v1445_v16, 0.0 }
 0x1b8   : > { %v1469_v55 = vsel %vm912_vm6, %v1442_v4, 0.0  ;;  %v1471_v18 = vsel %vm912_vm6, %v1443_v5, 0.0 }
 0x1b9   : > { %v1417_v9 = vadd.f32 %v1416_v11, %v1415_v6  ;;  %v1470_v61 = vadd.f32 %v1469_v55, %v1468_v7 }
 0x1bb   : > { %v1419_v19 = vadd.f32 %v1418_v12, %v1417_v9  ;;  %v1472_v21 = vadd.f32 %v1471_v18, %v1470_v61 }
 0x1bd   : > { %v1421_v24 = vadd.f32 %v1420_v22, %v1419_v19  ;;  %v1474_v25 = vadd.f32 %v1473_v23, %v1472_v21 }
 0x1bf   : > { %v1422_v20 = vrot.slane %v1421_v24, 4  ;;  %v1476_v15 = vadd.f32 %v1475_v27, %v1474_v25 }
 0x1c1   : > { %v1423_v13 = vadd.f32 %v1422_v20, %v1421_v24  ;;  %v1477_v28 = vrot.slane %v1476_v15, 4 }
 0x1c3   : > { %v1424_v29 = vrot.slane %v1423_v13, 2  ;;  %v1478_v30 = vadd.f32 %v1477_v28, %v1476_v15 }
 0x1c5   : > { %v1425_v31 = vadd.f32 %v1424_v29, %v1423_v13  ;;  %v1479_v32 = vrot.slane %v1478_v30, 2 }
 0x1c7   : > { %v1426_v26 = vrot.slane %v1425_v31, 1  ;;  %v1480_v33 = vadd.f32 %v1479_v32, %v1478_v30 }
 0x1c9   : > { %v1427_v50 = vadd.f32 %v1426_v26, %v1425_v31  ;;  %v1481_v1 = vrot.slane %v1480_v33, 1 }
 0x1cb   : > { %1429 = vst.msk [vmem:[%s449_s13] sm:$0x1] %vm1428_vm10, %v1427_v50  ;;  %v1482_v34 = vadd.f32 %v1481_v1, %v1480_v33 }
 0x1cd   : > { %1483 = vst.msk [vmem:[%s456_s7] sm:$0x1] %vm1428_vm10, %v1482_v34 }
 0x1ce PF: > { %s17_s25 = sadd.s32 1, %s2032_s25   ;;  %s2536_s21 = smov %s2024_s23 }
 0x1cf   : > { %p14_p0 = scmp.ge.s32.totalorder %s17_s25, 6   ;;  %s2537_s22 = smov %s2028_s24 }
 0x1d0   : > { %s2538_s23 = smov %s2541_s26  ;;  %s2539_s24 = smov %s2545_s27 }
 0x1d1   :  { %16 = sbr.rel (!%p14_p0) target bundleno = 3 (0x3), region = 98 }

// kernel: double_conv.4
= control target key start
LH: loop header
LB: loop body
LE: loop exit
PB: predicated region body
PF: predicated region fallthrough
CT: control target
= control target key end

     0   :  { %s2252_s27 = smov 0   ;;  %s2254_s28 = smov 0   ;;  %s2789_s0 = inlined_call_operand.vmem [shape: bf16[2,16,16,8], index: 0, kind: input, shape index: {}, may-alias: {0,1,2}]   ;;  %s2790_s1 = inlined_call_operand.vmem [shape: bf16[2,16,16,8], index: 1, kind: input, shape index: {}, may-alias: {0,1,2}]   ;;  %s2791_s2 = inlined_call_operand.vmem [shape: bf16[2,16,16,8], index: 2, kind: input, shape index: {}, may-alias: {0,1,2}]   ;;  %s2792_s3 = inlined_call_operand.vmem [shape: f32[1,1,8], index: 3, kind: input, shape index: {}]   ;;  %s2793_s4 = inlined_call_operand.vmem [shape: f32[1,1,8], index: 4, kind: input, shape index: {}]   ;;  %s2794_s5 = inlined_call_operand.vmem [shape: bf16[3,24,8], index: 5, kind: input, shape index: {}]   ;;  %s2795_s6 = inlined_call_operand.vmem [shape: bf16[2,16,16,8], index: 6, kind: output, shape index: {0}]   ;;  %s2796_s7 = inlined_call_operand.vmem [shape: f32[2,2,1,8], index: 7, kind: output, shape index: {1}]   ;;  %s2797_s8 = inlined_call_operand.vmem [shape: f32[2,2,1,8], index: 8, kind: output, shape index: {2}]  }
   0x1   :  { %s2256_s29 = smov 0   ;;  %s2258_s30 = smov 0  }
   0x2   :  { %s2260_s9 = smov 0  }
   0x3 LB: > { %s28_s10 = sadd.s32 1, %s2195_s29  ;;  %s31_s11 = sadd.s32 1, %s2199_s30  ;;  %s2203_s9 = sphi %s2260_s9, %s19_s9   ;;  %s2199_s30 = sphi %s2258_s30, %s2804_s30   ;;  %s2195_s29 = sphi %s2256_s29, %s2803_s29   ;;  %s2191_s28 = sphi %s2254_s28, %s2802_s28   ;;  %s2187_s27 = sphi %s2252_s27, %s2801_s27  }
   0x4   : > { %p29_p0 = scmp.ge.s32.totalorder %s28_s10, 2  ;;  %p1838_p1 = scmp.ge.s32.totalorder %s2203_s9, 1 }
   0x5   : > { %p357_p2 = scmp.lt.s32.totalorder %s2203_s9, 5 }
   0x6   : > { %s2806_s10 = smov (%p29_p0, %s28_s10), 0  ;;  %s2808_s11 = smov (!%p29_p0, %s31_s11), %s2199_s30 }
   0x7   : > { %p358_p3 = pnand %p1838_p1, %p357_p2  ;;  %p33_p4 = scmp.ge.s32.totalorder %s2808_s11, 2 }
   0x8   : > { %s2285_s12 = sshll.u32 (!%p358_p3), %s2187_s27, 3  ;;  %p442_p5 = scmp.lt.s32.totalorder (!%p358_p3), %s2191_s28, 1  ;;  %v2309_v0 = vld [vmem:[%s2792_s3] ss:$0 sm:$0xff] (!%p358_p3)  ;;  %vm762_vm0 = vcmask (!%p358_p3), 1040384   ;;  %v2159_v58 = vld [vmem:[%s2794_s5 + $0xc] sm:$0xff] (!%p358_p3)  }
   0x9   : > { %s2810_s11 = smov (%p33_p4, %s2808_s11), 0  ;;  %361 = sbr.rel (%p358_p3) target bundleno = 470 (0x1d6), region = 44 }
   0xa   : > { %p444_p6 = scmp.lt.s32.totalorder (!%p358_p3), %s2285_s12, 15  ;;  %s1844_s16 = sadd.s32 (!%p358_p3), 4294967295, %s2285_s12  ;;  %v2319_v9 = vld [vmem:[%s2793_s4] ss:$0 sm:$0xff] (!%p358_p3)  ;;  %vm763_vm1 = vsmask.f32 (!%p358_p3), 256  ;;  %2017 = vmatprep.subr.bf16.mxu1 (!%p358_p3), %v2159_v58 }
   0xb   : > { %p454_p7 = scmp.gt.s32.totalorder (!%p358_p3), %s1844_s16, 0  ;;  %p1845_p8 = scmp.lt.s32.totalorder (!%p358_p3), %s1844_s16, 15  ;;  %vm785_vm2 = vsmask.f32 (!%p358_p3), 7424  ;;  %vm2372_vm3 = vmand (!%p358_p3), %vm762_vm0, %vm763_vm1  ;;  %vm946_vm4 = vcmask (!%p358_p3), 1046528   ;;  %2018 = vmatpush3.bf16.msra.mxu1 (!%p358_p3), %v2159_v58  ;;  %vm1072_vm5 = vcmask (!%p358_p3), 1043456  }
   0xc   : > { %p627_p9 = scmp.gt.s32.totalorder (!%p358_p3), %s2187_s27, 0  ;;  %s470_s25 = sadd.s32 (!%p358_p3), 8, %s2285_s12  ;;  %vm1018_vm6 = vcmask (!%p358_p3), 130048   ;;  %vm997_vm7 = vcmask (!%p358_p3), 64512   ;;  %vm1055_vm8 = vcmask (!%p358_p3), 195584   ;;  %vm1479_vm9 = vcmask (!%p358_p3), 60416  }
   0xd   : > { %p2355_p11 = scmp.lt.s32.totalorder (!%p358_p3), %s470_s25, 15  ;;  %p499_p12 = scmp.lt.s32.totalorder (!%p358_p3), %s2187_s27, 1  ;;  %vm1549_vm10 = vcmask (!%p358_p3), 57344  }
  0x10   : > { %s2812_s28 = smov (!%p442_p5, %s2191_s28), 1  ;;  %s2818_s25 = smov (!%p2355_p11, %s470_s25), 15 }
  0x11   : > { %s445_s13 = scalar_select %p444_p6, %s2285_s12, 15 }
  0x12   : > { %s2292_s14 = sshll.u32 %s2812_s28, 5  ;;  %s2820_s25 = smov (!%p2355_p11, %s2818_s25), 15 }
  0x13   : > { %s1840_s15 = sshll.u32 %s445_s13, 1  ;;  %s2824_s27 = smov (!%p499_p12, %s2187_s27), 1 }
  0x14   : > { %s2296_s17 = sadd.s32 %s2292_s14, %s1840_s15 }
  0x15   : > { %s1842_s18 = sshll.u32 %s2296_s17, 2  ;;  %s1864_s17 = sshll.u32 %s2812_s28, 1 }
  0x16   : > { %s2304_s21 = scalar_lea.vmem %s2789_s0, %s1842_s18 }
  0x17   : > { %v1980_v1 = vld [vmem:[%s2304_s21 + $0x8] sm:$0xff]   ;;  %v1941_v2 = vld [vmem:[%s2304_s21] sm:$0xff]   ;;  %s455_s24 = scalar_select %p454_p7, %s1844_s16, 0  ;;  %v1982_v3 = vld [vmem:[%s2304_s21 + $0x18] sm:$0xff]  }
  0x18   : > { %v1946_v4 = vunpack.c.l.bf16 %v1980_v1  ;;  %v1947_v5 = vunpack.c.h.bf16 %v1980_v1  ;;  %v1942_v6 = vunpack.c.l.bf16 %v1941_v2  ;;  %v1943_v7 = vunpack.c.h.bf16 %v1941_v2  ;;  %v1981_v8 = vld [vmem:[%s2304_s21 + $0x10] sm:$0xff]   ;;  %s628_s13 = scalar_select %p627_p9, 1, 0  ;;  %v2349_v43 = vld [vmem:[%s2304_s21 + $0x28] sm:$0xff]   ;;  %v2388_v1 = vld [vmem:[%s2794_s5] sm:$0xff]  }
  0x19   : > { %s2814_s24 = smov (!%p1845_p8, %s455_s24), 15  ;;  %v1954_v10 = vunpack.c.l.bf16 %v1982_v3  ;;  %v1955_v11 = vunpack.c.h.bf16 %v1982_v3  ;;  %v1950_v12 = vunpack.c.l.bf16 %v1981_v8  ;;  %v1951_v13 = vunpack.c.h.bf16 %v1981_v8  ;;  %2037 = vmatprep.subr.bf16.mxu0 %v2388_v1 }
  0x1a   : > { %v558_v14 = vmul.f32 %v1946_v4, %v2309_v0  ;;  %v559_v15 = vmul.f32 %v1947_v5, %v2309_v0  ;;  %v556_v16 = vmul.f32 %v1942_v6, %v2309_v0  ;;  %v557_v17 = vmul.f32 %v1943_v7, %v2309_v0  ;;  %s1850_s15 = sshll.u32 %s2814_s24, 1  ;;  %s2335_s19 = scvt.s32.f32 %s628_s13  ;;  %2038 = vmatpush3.bf16.msra.mxu0 %v2388_v1 }
  0x1b   : > { %v562_v18 = vmul.f32 %v1954_v10, %v2309_v0  ;;  %v563_v19 = vmul.f32 %v1955_v11, %v2309_v0  ;;  %v560_v20 = vmul.f32 %v1950_v12, %v2309_v0  ;;  %v561_v21 = vmul.f32 %v1951_v13, %v2309_v0  ;;  %s462_s16 = sadd.s32 %s1850_s15, %s2292_s14 }
  0x1c   : > { %v580_v22 = vadd.f32 %v2319_v9, %v558_v14  ;;  %v581_v23 = vadd.f32 %v2319_v9, %v559_v15  ;;  %v578_v24 = vadd.f32 %v2319_v9, %v556_v16  ;;  %v579_v25 = vadd.f32 %v2319_v9, %v557_v17  ;;  %s1852_s20 = sshll.u32 %s462_s16, 2  ;;  %s632_s26 = sshrl.u32 %s2335_s19, 16 }
  0x1d   : > { %v584_v26 = vadd.f32 %v2319_v9, %v562_v18  ;;  %v585_v27 = vadd.f32 %v2319_v9, %v563_v19  ;;  %v582_v28 = vadd.f32 %v2319_v9, %v560_v20  ;;  %v583_v29 = vadd.f32 %v2319_v9, %v561_v21  ;;  %s464_s24 = scalar_lea.vmem %s2790_s1, %s1852_s20  ;;  %p631_p10 = scmp.ne.f32.partialorder %s2335_s19, %s2335_s19 }
  0x1e   : > { %v596_v30 = vmax.f32 %v580_v22, 0.0  ;;  %v597_v31 = vmax.f32 %v581_v23, 0.0  ;;  %v594_v32 = vmax.f32 %v578_v24, 0.0  ;;  %v595_v33 = vmax.f32 %v579_v25, 0.0  ;;  %v1973_v34 = vld [vmem:[%s464_s24] sm:$0xff]   ;;  %s633_s13 = sand.u32 1, %s632_s26 }
  0x1f   : > { %v600_v35 = vmax.f32 %v584_v26, 0.0  ;;  %v601_v36 = vmax.f32 %v585_v27, 0.0  ;;  %v598_v37 = vmax.f32 %v582_v28, 0.0  ;;  %v599_v38 = vmax.f32 %v583_v29, 0.0  ;;  %s634_s15 = sadd.s32 32767, %s633_s13  ;;  %s2430_s16 = sshll.u32 %s2820_s25, 1 }
  0x20   : > { %v611_v39 = vpack.c.bf16 %v597_v31, %v596_v30  ;;  %v610_v40 = vpack.c.bf16 %v595_v33, %v594_v32  ;;  %v1974_v41 = vunpack.c.l.bf16 %v1973_v34  ;;  %v1975_v42 = vunpack.c.h.bf16 %v1973_v34  ;;  %s635_s20 = sadd.s32 %s634_s15, %s2335_s19  ;;  %s479_s25 = sadd.s32 %s2430_s16, %s2292_s14 }
  0x21   : > { %v613_v44 = vpack.c.bf16 %v601_v36, %v600_v35  ;;  %v2351_v45 = vpack.c.bf16 %v599_v38, %v598_v37  ;;  %s636_s22 = sand.u32 4294901760, %s635_s20  ;;  %v1962_v53 = vunpack.c.l.bf16 %v2349_v43  ;;  %v1963_v57 = vunpack.c.h.bf16 %v2349_v43  ;;  %s2462_s14 = sshll.u32 %s479_s25, 2 }
  0x22   : > { %v687_v46 = vshrl.u32 %v611_v39, 16  ;;  %v690_v47 = vshll.u32 %v611_v39, 16  ;;  %v680_v48 = vshrl.u32 %v610_v40, 16  ;;  %v683_v49 = vshll.u32 %v610_v40, 16  ;;  %s2816_s22 = smov (%p631_p10, %s636_s22), 2143289344  ;;  %s2206_s16 = smov 16  }
  0x23   : > { %v620_v50 = vmul.f32 %v1974_v41, %v2309_v0  ;;  %v621_v51 = vmul.f32 %v1975_v42, %v2309_v0  ;;  %v701_v52 = vshrl.u32 %v613_v44, 16  ;;  %v704_v56 = vshll.u32 %v613_v44, 16  ;;  %s639_s13 = sshrl.u32 %s2816_s22, 16  ;;  %s2205_s22 = smov 8  }
  0x24   : > { %v689_v54 = vrot.slane %v687_v46, 7  ;;  %v682_v55 = vrot.slane %v680_v48, 7  ;;  %v694_v63 = vshrl.u32 %v2351_v45, 16  ;;  %s640_s12 = sshll.u32 %s639_s13, 16  ;;  %v697_v13 = vshll.u32 %v2351_v45, 16 }
  0x25   : > { %v622_v60 = vadd.f32 %v2319_v9, %v620_v50  ;;  %v623_v61 = vadd.f32 %v2319_v9, %v621_v51  ;;  %v703_v62 = vrot.slane %v701_v52, 7  ;;  %s641_s15 = sor.u32 %s640_s12, %s639_s13  ;;  %v2408_v14 = vmul.f32 %v1962_v53, %v2309_v0  ;;  %s481_s12 = scalar_lea.vmem %s2791_s2, %s2462_s14 }
  0x26   : > { %v692_v2 = vor.u32 %v690_v47, %v689_v54  ;;  %v777_v3 = vsel %vm2372_vm3, %v689_v54, 0  ;;  %v685_v4 = vor.u32 %v683_v49, %v682_v55  ;;  %v2394_v5 = vsel %vm2372_vm3, %v682_v55, 0  ;;  %s655_s20 = scalar_select %p499_p12, 1, 0 }
  0x27   : > { %v818_v6 = vshll.u32 %v777_v3, 16  ;;  %v806_v7 = vshll.u32 %v2394_v5, 16  ;;  %v624_v8 = vmax.f32 %v622_v60, 0.0  ;;  %v625_v10 = vmax.f32 %v623_v61, 0.0 }
  0x28   : > { %v2400_v11 = vsel %vm2372_vm3, 0, %v692_v2  ;;  %v2404_v12 = vsel %vm2372_vm3, 0, %v685_v4  ;;  %v954_v18 = vrot.slane %v777_v3, 1  ;;  %v642_v22 = vstv %s641_s15  ;;  %s2453_s23 = scvt.s32.f32 %s655_s20 }
  0x29   : > { %v811_v15 = vshrl.u32 %v2400_v11, 16  ;;  %v813_v16 = vshll.u32 %v2400_v11, 16  ;;  %v820_v17 = vrot.slane %v818_v6, 1  ;;  %v799_v19 = vshrl.u32 %v2404_v12, 16 }
  0x2a   : > { %v801_v20 = vshll.u32 %v2404_v12, 16  ;;  %v626_v21 = vpack.c.bf16 %v625_v10, %v624_v8  ;;  %v808_v24 = vrot.slane %v806_v7, 1  ;;  %v953_v25 = vrot.slane %v2400_v11, 1  ;;  %s659_s24 = sshrl.u32 %s2453_s23, 16  ;;  %v1983_v8 = vld [vmem:[%s2304_s21 + $0x20] sm:$0xff]   ;;  %p658_p13 = scmp.ne.f32.partialorder %s2453_s23, %s2453_s23 }
  0x2b   : > { %v815_v23 = vrot.slane %v813_v16, 1  ;;  %v706_v26 = vor.u32 %v704_v56, %v703_v62  ;;  %v2422_v29 = vsel %vm2372_vm3, %v703_v62, 0  ;;  %v696_v30 = vrot.slane %v694_v63, 7  ;;  %s2471_s19 = sand.u32 1, %s659_s24 }
  0x2c   : > { %v803_v27 = vrot.slane %v801_v20, 1  ;;  %v644_v28 = vmul.bf16 %v642_v22, %v626_v21  ;;  %v950_v32 = vrot.slane %v2404_v12, 1  ;;  %v951_v33 = vrot.slane %v2394_v5, 1  ;;  %v1985_v22 = vld [vmem:[%s2304_s21 + $0x30] sm:$0xff]   ;;  %s661_s15 = sadd.s32 32767, %s2471_s19 }
  0x2d   : > { %v816_v31 = vor.u32 %v815_v23, %v811_v15  ;;  %v2428_v34 = vsel %vm2372_vm3, 0, %v706_v26  ;;  %v842_v41 = vshll.u32 %v2422_v29, 16  ;;  %v699_v42 = vor.u32 %v697_v13, %v696_v30 }
  0x2e   : > { %v804_v35 = vor.u32 %v803_v27, %v799_v19  ;;  %v673_v36 = vshrl.u32 %v644_v28, 16  ;;  %v676_v37 = vshll.u32 %v644_v28, 16  ;;  %v835_v38 = vshrl.u32 %v2428_v34, 16 }
  0x2f   : > { %v821_v39 = vsel %vm785_vm2, %v816_v31, %v820_v17  ;;  %v837_v40 = vshll.u32 %v2428_v34, 16  ;;  %v955_v46 = vsel %vm946_vm4, %v953_v25, %v954_v18  ;;  %v2443_v47 = vsel %vm2372_vm3, %v696_v30, 0  ;;  %v1986_v17 = vld [vmem:[%s2304_s21 + $0x38] sm:$0xff]   ;;  %s2499_s21 = sadd.s32 %s661_s15, %s2453_s23 }
  0x30   : > { %910 = vrot.lane.b32.xlu1 %v821_v39, %s2205_s22  ;;  %v809_v44 = vsel %vm785_vm2, %v804_v35, %v808_v24  ;;  %v675_v45 = vrot.slane %v673_v36, 7  ;;  %v844_v49 = vrot.slane %v842_v41, 1  ;;  %v2450_v50 = vsel %vm2372_vm3, 0, %v699_v42  ;;  %s663_s20 = sand.u32 4294901760, %s2499_s21 }
  0x31   : > { %908 = vrot.lane.b32.xlu0 %v809_v44, %s2205_s22  ;;  %v839_v48 = vrot.slane %v837_v40, 1  ;;  %v830_v51 = vshll.u32 %v2443_v47, 16  ;;  %v823_v54 = vshrl.u32 %v2450_v50, 16  ;;  %v825_v55 = vshll.u32 %v2450_v50, 16  ;;  %s2822_s20 = smov (%p658_p13, %s663_s20), 2143289344 }
  0x32   : > { %v678_v52 = vor.u32 %v676_v37, %v675_v45  ;;  %v775_v53 = vsel %vm2372_vm3, %v675_v45, 0  ;;  %v2460_v60 = vsel %vm946_vm4, %v950_v32, %v951_v33  ;;  %v959_v2 = vrot.slane %v2428_v34, 1  ;;  %s666_s25 = sshrl.u32 %s2822_s20, 16 }
  0x33   : > { %v948_v56 = vrot.slane %v775_v53, 1  ;;  %v794_v58 = vshll.u32 %v775_v53, 16  ;;  %v840_v61 = vor.u32 %v839_v48, %v835_v38  ;;  %v827_v63 = vrot.slane %v825_v55, 1  ;;  %s667_s23 = sshll.u32 %s666_s25, 16 }
  0x34   : > { %v2467_v62 = vsel %vm2372_vm3, 0, %v678_v52  ;;  %v960_v3 = vrot.slane %v2422_v29, 1  ;;  %v832_v7 = vrot.slane %v830_v51, 1  ;;  %v956_v16 = vrot.slane %v2450_v50, 1  ;;  %v1977_v29 = vld [vmem:[%s481_s12] sm:$0xff]   ;;  %s2556_s14 = sor.u32 %s667_s23, %s666_s25  ;;  %s2698_s25 = scalar_lea.vmem %s2795_s6, %s1842_s18 }
  0x35   : > { %v947_v4 = vrot.slane %v2467_v62, 1  ;;  %v787_v5 = vshrl.u32 %v2467_v62, 16  ;;  %v789_v6 = vshll.u32 %v2467_v62, 16  ;;  %v796_v10 = vrot.slane %v794_v58, 1  ;;  %s502_s18 = sadd.s32 %s1864_s17, %s2824_s27 }
  0x36   : > { %v845_v13 = vsel %vm785_vm2, %v840_v61, %v844_v49  ;;  %v828_v15 = vor.u32 %v827_v63, %v823_v54  ;;  %v567_v20 = vmul.f32 %v1963_v57, %v2309_v0  ;;  %v588_v21 = vadd.f32 %v2319_v9, %v2408_v14  ;;  %s503_s24 = scalar_lea.vmem %s2796_s7, %s502_s18  ;;  %s510_s13 = scalar_lea.vmem %s2797_s8, %s502_s18 }
  0x37   : > { %v949_v18 = vsel %vm946_vm4, %v947_v4, %v948_v56  ;;  %v791_v19 = vrot.slane %v789_v6, 1  ;;  %v961_v23 = vsel %vm946_vm4, %v959_v2, %v960_v3  ;;  %v957_v24 = vrot.slane %v2443_v47, 1 }
  0x38   : > { %977 = vrot.lane.b32.xlu1 %v949_v18, %s2206_s16  ;;  %v1958_v25 = vunpack.c.l.bf16 %v1983_v8  ;;  %v1959_v26 = vunpack.c.h.bf16 %v1983_v8  ;;  %v589_v28 = vadd.f32 %v2319_v9, %v567_v20  ;;  %v604_v43 = vmax.f32 %v588_v21, 0.0 }
  0x39   : > { %v792_v27 = vor.u32 %v791_v19, %v787_v5  ;;  %v1970_v57 = vunpack.c.l.bf16 %v1986_v17  ;;  %v1971_v31 = vunpack.c.h.bf16 %v1986_v17  ;;  %v1966_v32 = vunpack.c.l.bf16 %v1985_v22 }
  0x3a   : > { %v564_v14 = vmul.f32 %v1958_v25, %v2309_v0  ;;  %v565_v30 = vmul.f32 %v1959_v26, %v2309_v0  ;;  %v605_v35 = vmax.f32 %v589_v28, 0.0  ;;  %v1967_v37 = vunpack.c.h.bf16 %v1985_v22 }
  0x3b   : > { %v797_v33 = vsel %vm785_vm2, %v792_v27, %v796_v10  ;;  %v570_v36 = vmul.f32 %v1970_v57, %v2309_v0  ;;  %v571_v40 = vmul.f32 %v1971_v31, %v2309_v0  ;;  %v1978_v41 = vunpack.c.l.bf16 %v1977_v29 }
  0x3c   : > { %906 = vrot.lane.b32.xlu0 %v797_v33, %s2205_s22  ;;  %981 = vrot.lane.b32.xlu1 %v955_v46, %s2206_s16  ;;  %v586_v38 = vadd.f32 %v2319_v9, %v564_v14  ;;  %v587_v39 = vadd.f32 %v2319_v9, %v565_v30  ;;  %v615_v42 = vpack.c.bf16 %v605_v35, %v604_v43  ;;  %v1979_v51 = vunpack.c.h.bf16 %v1977_v29 }
  0x3d   : > { %v592_v44 = vadd.f32 %v2319_v9, %v570_v36  ;;  %v568_v45 = vmul.f32 %v1966_v32, %v2309_v0  ;;  %v569_v47 = vmul.f32 %v1967_v37, %v2309_v0  ;;  %v593_v49 = vadd.f32 %v2319_v9, %v571_v40 }
  0x3e   : > { %v602_v46 = vmax.f32 %v586_v38, 0.0  ;;  %v603_v48 = vmax.f32 %v587_v39, 0.0  ;;  %v715_v52 = vshrl.u32 %v615_v42, 16  ;;  %v718_v53 = vshll.u32 %v615_v42, 16 }
  0x3f   : > { %v608_v54 = vmax.f32 %v592_v44, 0.0  ;;  %v590_v55 = vadd.f32 %v2319_v9, %v568_v45  ;;  %v833_v56 = vsel %vm785_vm2, %v828_v15, %v832_v7  ;;  %v609_v61 = vmax.f32 %v593_v49, 0.0 }
  0x40   : > { %979 = vrot.lane.b32.xlu0 %v2460_v60, %s2206_s16  ;;  %914 = vrot.lane.b32.xlu1 %v845_v13, %s2205_s22  ;;  %v614_v58 = vpack.c.bf16 %v603_v48, %v602_v46  ;;  %v591_v63 = vadd.f32 %v2319_v9, %v569_v47  ;;  %v717_v2 = vrot.slane %v715_v52, 7  ;;  %v647_v4 = vmul.f32 %v1978_v41, %v2309_v0 }
  0x41   : > { %v606_v3 = vmax.f32 %v590_v55, 0.0  ;;  %v648_v5 = vmul.f32 %v1979_v51, %v2309_v0  ;;  %v617_v8 = vpack.c.bf16 %v609_v61, %v608_v54  ;;  %v958_v15 = vsel %vm946_vm4, %v956_v16, %v957_v24  ;;  %v2577_v61 = vld [vmem:[%s2794_s5 + $0x8] ss:$0 sps:$4 sm:$0xff]  }
  0x42   : > { %v708_v6 = vshrl.u32 %v614_v58, 16  ;;  %v711_v60 = vshll.u32 %v614_v58, 16  ;;  %v607_v10 = vmax.f32 %v591_v63, 0.0  ;;  %v720_v13 = vor.u32 %v718_v53, %v717_v2  ;;  %v2161_v53 = vld [vmem:[%s2794_s5 + $0x14] ss:$0 sps:$4 sm:$0xff]   ;;  %2114 = vmatprep.subr.msk.bf16.mxu0 %vm1072_vm5, %v2577_v61 }
  0x43   : > { %v781_v7 = vsel %vm2372_vm3, %v717_v2, 0  ;;  %v729_v19 = vshrl.u32 %v617_v8, 16  ;;  %v649_v21 = vadd.f32 %v2319_v9, %v647_v4  ;;  %v650_v22 = vadd.f32 %v2319_v9, %v648_v5  ;;  %2113 = vmatprep.subr.msk.bf16.mxu1 %vm1072_vm5, %v2161_v53 }
  0x44   : > { %912 = vrot.lane.b32.xlu0 %v833_v56, %s2205_s22  ;;  %985 = vrot.lane.b32.xlu1 %v961_v23, %s2206_s16  ;;  %v866_v17 = vshll.u32 %v781_v7, 16  ;;  %v710_v18 = vrot.slane %v708_v6, 7  ;;  %v2538_v0 = vsel %vm2372_vm3, 0, %v720_v13  ;;  %v616_v20 = vpack.c.bf16 %v607_v10, %v606_v3 }
  0x45   : > { %v859_v25 = vshrl.u32 %v2538_v0, 16  ;;  %v861_v23 = vshll.u32 %v2538_v0, 16  ;;  %v732_v27 = vshll.u32 %v617_v8, 16  ;;  %v966_v24 = vrot.slane %v781_v7, 1 }
  0x46   : > { %v713_v26 = vor.u32 %v711_v60, %v710_v18  ;;  %v780_v16 = vsel %vm2372_vm3, %v710_v18, 0  ;;  %v731_v28 = vrot.slane %v729_v19, 7  ;;  %v722_v43 = vshrl.u32 %v616_v20, 16 }
  0x47   : > { %v863_v57 = vrot.slane %v861_v23, 1  ;;  %v868_v29 = vrot.slane %v866_v17, 1  ;;  %v854_v14 = vshll.u32 %v780_v16, 16  ;;  %v965_v32 = vrot.slane %v2538_v0, 1 }
  0x48   : > { %983 = vrot.lane.b32.xlu0 %v958_v15, %s2206_s16  ;;  %v2549_v9 = vsel %vm2372_vm3, 0, %v713_v26  ;;  %v651_v33 = vmax.f32 %v649_v21, 0.0  ;;  %v963_v36 = vrot.slane %v780_v16, 1  ;;  %v734_v37 = vor.u32 %v732_v27, %v731_v28  ;;  %v2593_v15 = vld [vmem:[%s2794_s5 + $0x18] sm:$0xff]  }
  0x49   : > { %v847_v30 = vshrl.u32 %v2549_v9, 16  ;;  %v849_v31 = vshll.u32 %v2549_v9, 16  ;;  %v864_v35 = vor.u32 %v863_v57, %v859_v25  ;;  %v783_v38 = vsel %vm2372_vm3, %v731_v28, 0 }
  0x4a   : > { %v856_v40 = vrot.slane %v854_v14, 1  ;;  %v890_v41 = vshll.u32 %v783_v38, 16  ;;  %v724_v42 = vrot.slane %v722_v43, 7  ;;  %v962_v45 = vrot.slane %v2549_v9, 1 }
  0x4b   : > { %v851_v39 = vrot.slane %v849_v31, 1  ;;  %v869_v44 = vsel %vm785_vm2, %v864_v35, %v868_v29  ;;  %v2562_v47 = vsel %vm2372_vm3, 0, %v734_v37  ;;  %v725_v46 = vshll.u32 %v616_v20, 16 }
  0x4c   : > { %918 = vrot.lane.b32.xlu1 %v869_v44, %s2205_s22  ;;  %v883_v49 = vshrl.u32 %v2562_v47, 16  ;;  %v885_v51 = vshll.u32 %v2562_v47, 16  ;;  %v669_v52 = vstv %s2556_s14  ;;  %v967_v54 = vsel %vm946_vm4, %v965_v32, %v966_v24 }
  0x4d   : > { %v852_v48 = vor.u32 %v851_v39, %v847_v30  ;;  %v727_v55 = vor.u32 %v725_v46, %v724_v42  ;;  %v782_v56 = vsel %vm2372_vm3, %v724_v42, 0  ;;  %v652_v58 = vmax.f32 %v650_v22, 0.0 }
  0x4e   : > { %v887_v2 = vrot.slane %v885_v51, 1  ;;  %v892_v3 = vrot.slane %v890_v41, 1  ;;  %v878_v4 = vshll.u32 %v782_v56, 16  ;;  %v964_v5 = vsel %vm946_vm4, %v962_v45, %v963_v36 }
  0x4f   : > { %v857_v63 = vsel %vm785_vm2, %v852_v48, %v856_v40  ;;  %v2584_v6 = vsel %vm2372_vm3, 0, %v727_v55  ;;  %v653_v60 = vpack.c.bf16 %v652_v58, %v651_v33  ;;  %v972_v7 = vrot.slane %v783_v38, 1  ;;  %v2164_v58 = vld [vmem:[%s2794_s5 + $0x20] ss:$0 sps:$4 sm:$0xff]  }
  0x50   : > { %916 = vrot.lane.b32.xlu0 %v857_v63, %s2205_s22  ;;  %989 = vrot.lane.b32.xlu1 %v967_v54, %s2206_s16  ;;  %v888_v8 = vor.u32 %v887_v2, %v883_v49  ;;  %v871_v10 = vshrl.u32 %v2584_v6, 16  ;;  %v873_v13 = vshll.u32 %v2584_v6, 16  ;;  %v971_v17 = vrot.slane %v2562_v47, 1 }
  0x51   : > { %v671_v18 = vmul.bf16 %v669_v52, %v653_v60  ;;  %v1074_v19 = vsel %vm1072_vm5, %v2161_v53, 0  ;;  %v2601_v20 = vsel %vm1072_vm5, %v2577_v61, 0  ;;  %v880_v25 = vrot.slane %v878_v4, 1 }
  0x52   : > { %v893_v21 = vsel %vm785_vm2, %v888_v8, %v892_v3  ;;  %v875_v22 = vrot.slane %v873_v13, 1  ;;  %2020 = vmatpush3.bf16.msra.mxu1 %v1074_v19  ;;  %2040 = vmatpush3.bf16.msra.mxu0 %v2601_v20  ;;  %v968_v16 = vrot.slane %v2584_v6, 1  ;;  %v969_v24 = vrot.slane %v782_v56, 1 }
  0x53   : > { %v736_v23 = vshrl.u32 %v671_v18, 16  ;;  %v739_v26 = vshll.u32 %v671_v18, 16  ;;  %2077 = vmatprep.subr.bf16.mxu1 %v2388_v1  ;;  %2057 = vmatprep.subr.bf16.mxu0 %v2593_v15  ;;  %v973_v28 = vsel %vm946_vm4, %v971_v17, %v972_v7 }
  0x54   : > { %987 = vrot.lane.b32.xlu0 %v964_v5, %s2206_s16  ;;  %922 = vrot.lane.b32.xlu1 %v893_v21, %s2205_s22  ;;  %v876_v27 = vor.u32 %v875_v22, %v871_v10  ;;  %v970_v30 = vsel %vm946_vm4, %v968_v16, %v969_v24 }
  0x55   : > { %v738_v43 = vrot.slane %v736_v23, 7 }
  0x56   : > { %v881_v57 = vsel %vm785_vm2, %v876_v27, %v880_v25 }
  0x57   : > { %v741_v29 = vor.u32 %v739_v26, %v738_v43  ;;  %v784_v14 = vsel %vm2372_vm3, %v738_v43, 0 }
  0x58   : > { %920 = vrot.lane.b32.xlu0 %v881_v57, %s2205_s22  ;;  %993 = vrot.lane.b32.xlu1 %v973_v28, %s2206_s16  ;;  %v902_v31 = vshll.u32 %v784_v14, 16  ;;  %v975_v32 = vrot.slane %v784_v14, 1 }
  0x59   : > { %v2619_v33 = vsel %vm2372_vm3, 0, %v741_v29 }
  0x5a   : > { %v895_v35 = vshrl.u32 %v2619_v33, 16  ;;  %v897_v36 = vshll.u32 %v2619_v33, 16  ;;  %v974_v37 = vrot.slane %v2619_v33, 1  ;;  %v904_v39 = vrot.slane %v902_v31, 1 }
  0x5c   : > { %991 = vrot.lane.b32.xlu0 %v970_v30, %s2206_s16  ;;  %v899_v38 = vrot.slane %v897_v36, 1  ;;  %v976_v40 = vsel %vm946_vm4, %v974_v37, %v975_v32 }
  0x5d   : > { %995 = vrot.lane.b32.xlu1 %v976_v40, %s2206_s16 }
  0x5e   : > { %v900_v41 = vor.u32 %v899_v38, %v895_v35 }
  0x60   : > { %v905_v42 = vsel %vm785_vm2, %v900_v41, %v904_v39 }
  0x61   : > { %924 = vrot.lane.b32.xlu0 %v905_v42, %s2205_s22 }
  0xa2   : > { %v911_v59 = vpop.permute.xlu1 %910 }
  0xa3   : > { %v909_v44 = vpop.permute.xlu0 %908  ;;  %v1003_v54 = vsel %vm997_vm7, %v2400_v11, %v911_v59 }
  0xa4   : > { %v1001_v52 = vsel %vm997_vm7, %v2404_v12, %v909_v44  ;;  %v1300_v12 = vsel %vm1072_vm5, %v2164_v58, 0 }
  0xaa   : > { %v978_v45 = vpop.permute.xlu1 %977 }
  0xae   : > { %v907_v46 = vpop.permute.xlu0 %906  ;;  %v982_v48 = vpop.permute.xlu1 %981 }
  0xaf   : > { %v999_v49 = vsel %vm997_vm7, %v2467_v62, %v907_v46  ;;  %v1024_v62 = vsel %vm1018_vm6, %v1003_v54, %v982_v48 }
  0xb0   : > { %v1020_v51 = vsel %vm1018_vm6, %v999_v49, %v978_v45 }
  0xb1   : > { %2041 = vmatprep.mubr.msk.bf16.mxu0 %vm1055_vm8, %v1020_v51 }
  0xb2   : > { %v980_v53 = vpop.permute.xlu0 %979  ;;  %v915_v56 = vpop.permute.xlu1 %914 }
  0xb3   : > { %v1022_v55 = vsel %vm1018_vm6, %v1001_v52, %v980_v53  ;;  %v1007_v63 = vsel %vm997_vm7, %v2428_v34, %v915_v56 }
  0xb4   : > { %2021 = vmatprep.mubr.msk.bf16.mxu1 %vm1055_vm8, %v1022_v55  ;;  %2042 = vmatmul.mubr.msk.bf16.vlgmr.msra.gmra.mrb[0].mxu0 %vm1055_vm8, %v1022_v55 }
  0xb5   : > { %2022 = vmatmul.mubr.msk.bf16.vlgmr.msra.gmra.mrb[0].mxu1 %vm1055_vm8, %v1024_v62  ;;  %2045 = vmatprep.mubr.msk.bf16.mxu0 %vm1055_vm8, %v1024_v62 }
  0xb6   : > { %2079 = vmatpush3.bf16.msra.mxu1 %v2388_v1  ;;  %2058 = vmatpush3.bf16.msra.mxu0 %v2593_v15  ;;  %v913_v11 = vpop.permute.xlu0 %912  ;;  %v986_v2 = vpop.permute.xlu1 %985 }
  0xb7   : > { %2116 = vmatprep.subr.msk.bf16.mxu0 %vm1072_vm5, %v2164_v58  ;;  %2115 = vmatprep.subr.msk.bf16.mxu1 %vm1072_vm5, %v2577_v61  ;;  %v1005_v3 = vsel %vm997_vm7, %v2450_v50, %v913_v11  ;;  %v1028_v5 = vsel %vm1018_vm6, %v1007_v63, %v986_v2 }
  0xba   : > { %v984_v4 = vpop.permute.xlu0 %983  ;;  %2060 = vmatpush3.bf16.msra.mxu0 %v1300_v12  ;;  %2080 = vmatpush3.bf16.msra.mxu1 %v2601_v20 }
  0xbb   : > { %v1026_v1 = vsel %vm1018_vm6, %v1005_v3, %v984_v4 }
  0xbc   : > { %2025 = vmatprep.mubr.msk.bf16.mxu1 %vm1055_vm8, %v1026_v1  ;;  %2046 = vmatmul.mubr.msk.bf16.gmra.mrb[4].mxu0 %vm1055_vm8, %v1026_v1 }
  0xbd   : > { %2026 = vmatmul.mubr.msk.bf16.gmra.mrb[4].mxu1 %vm1055_vm8, %v1028_v5  ;;  %2061 = vmatprep.mubr.msk.bf16.mxu0 %vm1055_vm8, %v1024_v62 }
  0xbe   : > { %v919_v34 = vpop.permute.xlu1 %918 }
  0xbf   : > { %v1011_v50 = vsel %vm997_vm7, %v2538_v0, %v919_v34 }
  0xc2   : > { %v917_v61 = vpop.permute.xlu0 %916  ;;  %v990_v60 = vpop.permute.xlu1 %989 }
  0xc3   : > { %v1009_v8 = vsel %vm997_vm7, %v2549_v9, %v917_v61  ;;  %v1032_v15 = vsel %vm1018_vm6, %v1011_v50, %v990_v60 }
  0xc4   : > { %2062 = vmatmul.mubr.msk.bf16.vlgmr.msra.gmra.mrb[0].mxu0 %vm1055_vm8, %v1026_v1 }
  0xc5   : > { %2065 = vmatprep.mubr.msk.bf16.mxu0 %vm1055_vm8, %v1028_v5 }
  0xc6   : > { %v988_v10 = vpop.permute.xlu0 %987  ;;  %v923_v7 = vpop.permute.xlu1 %922 }
  0xc7   : > { %v1030_v13 = vsel %vm1018_vm6, %v1009_v8, %v988_v10  ;;  %v1015_v0 = vsel %vm997_vm7, %v2562_v47, %v923_v7 }
  0xc8   : > { %2029 = vmatprep.mubr.msk.bf16.mxu1 %vm1055_vm8, %v1030_v13 }
  0xc9   : > { %2030 = vmatmul.mubr.msk.bf16.gmra.mrb[8].mxu1 %vm1055_vm8, %v1032_v15 }
  0xca   : > { %v921_v17 = vpop.permute.xlu0 %920  ;;  %v994_v18 = vpop.permute.xlu1 %993 }
  0xcb   : > { %v1013_v9 = vsel %vm997_vm7, %v2584_v6, %v921_v17  ;;  %v1036_v21 = vsel %vm1018_vm6, %v1015_v0, %v994_v18 }
  0xcc   : > { %2066 = vmatmul.mubr.msk.bf16.gmra.mrb[4].mxu0 %vm1055_vm8, %v1030_v13 }
  0xcd   : > { %2069 = vmatprep.mubr.msk.bf16.mxu0 %vm1055_vm8, %v1032_v15 }
  0xce   : > { %v992_v19 = vpop.permute.xlu0 %991 }
  0xcf   : > { %v1034_v20 = vsel %vm1018_vm6, %v1013_v9, %v992_v19  ;;  %v996_v6 = vpop.permute.xlu1 %995 }
  0xd0   : > { %2033 = vmatprep.mubr.msk.bf16.mxu1 %vm1055_vm8, %v1034_v20 }
  0xd1   : > { %2034 = vmatmul.mubr.msk.bf16.gmra.mrb[12].mxu1 %vm1055_vm8, %v1036_v21 }
  0xd2   : > { %2049 = vmatprep.mubr.msk.bf16.mxu1 %vm1055_vm8, %v1028_v5 }
  0xd3   : > { %v925_v47 = vpop.permute.xlu0 %924 }
  0xd4   : > { %2070 = vmatmul.mubr.msk.bf16.gmra.mrb[8].mxu0 %vm1055_vm8, %v1034_v20  ;;  %v1017_v22 = vsel %vm997_vm7, %v2619_v33, %v925_v47 }
  0xd5   : > { %2073 = vmatprep.mubr.msk.bf16.mxu0 %vm1055_vm8, %v1036_v21  ;;  %v1038_v25 = vsel %vm1018_vm6, %v1017_v22, %v996_v6 }
  0xd9   : > { %2050 = vmatmul.mubr.msk.bf16.vlgmr.msra.gmra.mrb[8].mxu1 %vm1055_vm8, %v1030_v13 }
  0xda   : > { %2053 = vmatprep.mubr.msk.bf16.mxu1 %vm1055_vm8, %v1032_v15 }
  0xdc   : > { %2074 = vmatmul.mubr.msk.bf16.gmra.mrb[12].mxu0 %vm1055_vm8, %v1038_v25 }
  0xe1   : > { %2054 = vmatmul.mubr.msk.bf16.gmra.mrb[12].mxu1 %vm1055_vm8, %v1034_v20 }
 0x188   : > { %v2023_v23 = vpop.f32.mrb[0].mxu1 }
 0x189   : > { %v1110_v26 = vpop.f32.mrb[1].mxu1 }
 0x18a   : > { %v2024_v27 = vpop.f32.mrb[2].mxu1 }
 0x18b   : > { %v1113_v16 = vpop.f32.mrb[3].mxu1 }
 0x190   : > { %v2027_v24 = vpop.f32.mrb[4].mxu1 }
 0x191   : > { %v1126_v28 = vpop.f32.mrb[5].mxu1 }
 0x192   : > { %v2028_v43 = vpop.f32.mrb[6].mxu1 }
 0x193   : > { %v1129_v57 = vpop.f32.mrb[7].mxu1 }
 0x197   : > { %v2063_v29 = vpop.f32.mrb[0].mxu0 }
 0x198   : > { %v2081_v14 = vadd.f32 %v2063_v29, %v2023_v23  ;;  %v1336_v30 = vpop.f32.mrb[1].mxu0 }
 0x199   : > { %v2082_v31 = vadd.f32 %v1336_v30, %v1110_v26  ;;  %v2064_v32 = vpop.f32.mrb[2].mxu0 }
 0x19a   : > { %v1926_v33 = vpack.c.bf16 %v2081_v14, %v2081_v14  ;;  %v2083_v35 = vadd.f32 %v2064_v32, %v2024_v27  ;;  %v1339_v36 = vpop.f32.mrb[3].mxu0 }
 0x19b   : > { %v1924_v37 = vpack.c.bf16 %v2082_v31, %v2082_v31  ;;  %v2084_v38 = vadd.f32 %v1339_v36, %v1113_v16 }
 0x19c   : > { %1482 = vst.msk [vmem:[%s2698_s25 + $0x8] sm:$0xf] %vm1479_vm9, %v1926_v33  ;;  %v1416_v39 = vpack.c.bf16 %v2083_v35, %v2081_v14  ;;  %v1927_v40 = vpack.c.bf16 %v2083_v35, %v2083_v35 }
 0x19d   : > { %1480 = vst.msk [vmem:[%s2698_s25] sm:$0xf] %vm1479_vm9, %v1924_v37  ;;  %v1415_v41 = vpack.c.bf16 %v2084_v38, %v2082_v31  ;;  %v1925_v42 = vpack.c.bf16 %v2084_v38, %v2084_v38 }
 0x19e   : > { %1483 = vst.msk [vmem:[%s2698_s25 + $0xc] sm:$0xf] %vm1479_vm9, %v1927_v40  ;;  %v1498_v59 = vunpack.c.l.bf16 %v1416_v39  ;;  %v1499_v44 = vunpack.c.h.bf16 %v1416_v39 }
 0x19f   : > { %1481 = vst.msk [vmem:[%s2698_s25 + $0x4] sm:$0xf] %vm1479_vm9, %v1925_v42  ;;  %v1496_v45 = vunpack.c.l.bf16 %v1415_v41  ;;  %v1497_v46 = vunpack.c.h.bf16 %v1415_v41  ;;  %v2067_v48 = vpop.f32.mrb[4].mxu0 }
 0x1a0   : > { %v1515_v49 = vsel %vm997_vm7, %v1498_v59, 0.0  ;;  %v1553_v51 = vmul.f32 %v1498_v59, %v1498_v59  ;;  %v1352_v52 = vpop.f32.mrb[5].mxu0  ;;  %v1517_v62 = vsel %vm997_vm7, %v1499_v44, 0.0  ;;  %v1554_v11 = vmul.f32 %v1499_v44, %v1499_v44 }
 0x1a1   : > { %v1512_v53 = vsel %vm997_vm7, %v1496_v45, 0.0  ;;  %v1513_v54 = vsel %vm997_vm7, %v1497_v46, 0.0  ;;  %v1551_v55 = vmul.f32 %v1496_v45, %v1496_v45  ;;  %v1552_v56 = vmul.f32 %v1497_v46, %v1497_v46  ;;  %v2068_v58 = vpop.f32.mrb[6].mxu0 }
 0x1a2   : > { %v1514_v12 = vadd.f32 %v1513_v54, %v1512_v53  ;;  %v2085_v63 = vadd.f32 %v2067_v48, %v2027_v24  ;;  %v1355_v2 = vpop.f32.mrb[7].mxu0  ;;  %v2086_v1 = vadd.f32 %v1352_v52, %v1126_v28  ;;  %v2087_v5 = vadd.f32 %v2068_v58, %v2028_v43 }
 0x1a3   : > { %v1567_v3 = vsel %vm997_vm7, %v1551_v55, 0.0  ;;  %v1568_v4 = vsel %vm997_vm7, %v1552_v56, 0.0  ;;  %v2088_v50 = vadd.f32 %v1355_v2, %v1129_v57  ;;  %v1570_v8 = vsel %vm997_vm7, %v1553_v51, 0.0 }
 0x1a4   : > { %v1516_v34 = vadd.f32 %v1515_v49, %v1514_v12  ;;  %v1569_v61 = vadd.f32 %v1568_v4, %v1567_v3  ;;  %v1930_v60 = vpack.c.bf16 %v2085_v63, %v2085_v63  ;;  %v1928_v10 = vpack.c.bf16 %v2086_v1, %v2086_v1 }
 0x1a5   : > { %v1418_v13 = vpack.c.bf16 %v2087_v5, %v2085_v63  ;;  %v1931_v7 = vpack.c.bf16 %v2087_v5, %v2087_v5  ;;  %v1417_v17 = vpack.c.bf16 %v2088_v50, %v2086_v1  ;;  %v1929_v0 = vpack.c.bf16 %v2088_v50, %v2088_v50 }
 0x1a6   : > { %v1571_v15 = vadd.f32 %v1570_v8, %v1569_v61  ;;  %1486 = vst.msk [vmem:[%s2698_s25 + $0x18] sm:$0xf] %vm1479_vm9, %v1930_v60  ;;  %v1518_v18 = vadd.f32 %v1517_v62, %v1516_v34  ;;  %v1572_v9 = vsel %vm997_vm7, %v1554_v11, 0.0  ;;  %1484 = vst.msk [vmem:[%s2698_s25 + $0x10] sm:$0xf] %vm1479_vm9, %v1928_v10 }
 0x1a7   : > { %1487 = vst.msk [vmem:[%s2698_s25 + $0x1c] sm:$0xf] %vm1479_vm9, %v1931_v7  ;;  %v2071_v19 = vpop.f32.mrb[8].mxu0  ;;  %v1502_v20 = vunpack.c.l.bf16 %v1418_v13  ;;  %1485 = vst.msk [vmem:[%s2698_s25 + $0x14] sm:$0xf] %vm1479_vm9, %v1929_v0  ;;  %v1500_v21 = vunpack.c.l.bf16 %v1417_v17  ;;  %v1501_v47 = vunpack.c.h.bf16 %v1417_v17  ;;  %v1503_v23 = vunpack.c.h.bf16 %v1418_v13 }
 0x1a8   : > { %v1573_v22 = vadd.f32 %v1572_v9, %v1571_v15  ;;  %v1368_v6 = vpop.f32.mrb[9].mxu0 }
 0x1a9   : > { %v2072_v25 = vpop.f32.mrb[10].mxu0  ;;  %v1519_v26 = vsel %vm997_vm7, %v1500_v21, 0.0  ;;  %v1555_v27 = vmul.f32 %v1500_v21, %v1500_v21  ;;  %v1556_v16 = vmul.f32 %v1501_v47, %v1501_v47  ;;  %v1557_v43 = vmul.f32 %v1502_v20, %v1502_v20 }
 0x1aa   : > { %v1371_v24 = vpop.f32.mrb[11].mxu0  ;;  %v1520_v28 = vadd.f32 %v1519_v26, %v1518_v18  ;;  %v1521_v57 = vsel %vm997_vm7, %v1501_v47, 0.0  ;;  %v1523_v35 = vsel %vm997_vm7, %v1502_v20, 0.0  ;;  %v1558_v36 = vmul.f32 %v1503_v23, %v1503_v23 }
 0x1ab   : > { %v1574_v29 = vsel %vm997_vm7, %v1555_v27, 0.0  ;;  %v1576_v37 = vsel %vm997_vm7, %v1556_v16, 0.0  ;;  %v1525_v46 = vsel %vm997_vm7, %v1503_v23, 0.0  ;;  %v1578_v48 = vsel %vm997_vm7, %v1557_v43, 0.0 }
 0x1ac   : > { %v2051_v14 = vpop.f32.mrb[8].mxu1  ;;  %v1522_v30 = vadd.f32 %v1521_v57, %v1520_v28  ;;  %v1575_v31 = vadd.f32 %v1574_v29, %v1573_v22  ;;  %v1580_v62 = vsel %vm997_vm7, %v1558_v36, 0.0 }
 0x1ad   : > { %v2089_v32 = vadd.f32 %v2071_v19, %v2051_v14  ;;  %v1253_v33 = vpop.f32.mrb[9].mxu1 }
 0x1ae   : > { %v2090_v38 = vadd.f32 %v1368_v6, %v1253_v33  ;;  %v2052_v39 = vpop.f32.mrb[10].mxu1  ;;  %v1524_v40 = vadd.f32 %v1523_v35, %v1522_v30  ;;  %v1577_v41 = vadd.f32 %v1576_v37, %v1575_v31 }
 0x1af   : > { %v1934_v42 = vpack.c.bf16 %v2089_v32, %v2089_v32  ;;  %v2091_v59 = vadd.f32 %v2072_v25, %v2052_v39  ;;  %v1256_v44 = vpop.f32.mrb[11].mxu1  ;;  %v2075_v45 = vpop.f32.mrb[12].mxu0 }
 0x1b0   : > { %v1932_v49 = vpack.c.bf16 %v2090_v38, %v2090_v38  ;;  %v2092_v51 = vadd.f32 %v1371_v24, %v1256_v44  ;;  %v1384_v52 = vpop.f32.mrb[13].mxu0  ;;  %v1579_v53 = vadd.f32 %v1578_v48, %v1577_v41  ;;  %v1526_v56 = vadd.f32 %v1525_v46, %v1524_v40 }
 0x1b1   : > { %1490 = vst.msk [vmem:[%s2698_s25 + $0x28] sm:$0xf] %vm1479_vm9, %v1934_v42  ;;  %v1420_v54 = vpack.c.bf16 %v2091_v59, %v2089_v32  ;;  %v1935_v55 = vpack.c.bf16 %v2091_v59, %v2091_v59  ;;  %v2076_v58 = vpop.f32.mrb[14].mxu0 }
 0x1b2   : > { %1488 = vst.msk [vmem:[%s2698_s25 + $0x20] sm:$0xf] %vm1479_vm9, %v1932_v49  ;;  %v1419_v11 = vpack.c.bf16 %v2092_v51, %v2090_v38  ;;  %v1933_v12 = vpack.c.bf16 %v2092_v51, %v2092_v51  ;;  %v1387_v63 = vpop.f32.mrb[15].mxu0  ;;  %v1581_v4 = vadd.f32 %v1580_v62, %v1579_v53 }
 0x1b3   : > { %1491 = vst.msk [vmem:[%s2698_s25 + $0x2c] sm:$0xf] %vm1479_vm9, %v1935_v55  ;;  %v1506_v2 = vunpack.c.l.bf16 %v1420_v54  ;;  %v1507_v3 = vunpack.c.h.bf16 %v1420_v54 }
 0x1b4   : > { %1489 = vst.msk [vmem:[%s2698_s25 + $0x24] sm:$0xf] %vm1479_vm9, %v1933_v12  ;;  %v1504_v1 = vunpack.c.l.bf16 %v1419_v11  ;;  %v1505_v5 = vunpack.c.h.bf16 %v1419_v11  ;;  %v2055_v34 = vpop.f32.mrb[12].mxu1 }
 0x1b5   : > { %v1269_v61 = vpop.f32.mrb[13].mxu1  ;;  %v1531_v60 = vsel %vm997_vm7, %v1506_v2, 0.0  ;;  %v1561_v7 = vmul.f32 %v1506_v2, %v1506_v2  ;;  %v1562_v15 = vmul.f32 %v1507_v3, %v1507_v3  ;;  %v2093_v0 = vadd.f32 %v2075_v45, %v2055_v34 }
 0x1b6   : > { %v1527_v50 = vsel %vm997_vm7, %v1504_v1, 0.0  ;;  %v1559_v8 = vmul.f32 %v1504_v1, %v1504_v1  ;;  %v1560_v10 = vmul.f32 %v1505_v5, %v1505_v5  ;;  %v2056_v13 = vpop.f32.mrb[14].mxu1  ;;  %v1529_v9 = vsel %vm997_vm7, %v1505_v5, 0.0 }
 0x1b7   : > { %v1528_v17 = vadd.f32 %v1527_v50, %v1526_v56  ;;  %v1272_v18 = vpop.f32.mrb[15].mxu1  ;;  %v2094_v20 = vadd.f32 %v1384_v52, %v1269_v61  ;;  %v2095_v21 = vadd.f32 %v2076_v58, %v2056_v13  ;;  %v1938_v6 = vpack.c.bf16 %v2093_v0, %v2093_v0 }
 0x1b8   : > { %v1582_v19 = vsel %vm997_vm7, %v1559_v8, 0.0  ;;  %v2096_v25 = vadd.f32 %v1387_v63, %v1272_v18  ;;  %v1584_v23 = vsel %vm997_vm7, %v1560_v10, 0.0  ;;  %v1533_v29 = vsel %vm997_vm7, %v1507_v3, 0.0 }
 0x1b9   : > { %v1530_v47 = vadd.f32 %v1529_v9, %v1528_v17  ;;  %v1583_v22 = vadd.f32 %v1582_v19, %v1581_v4  ;;  %v1936_v26 = vpack.c.bf16 %v2094_v20, %v2094_v20  ;;  %v1422_v27 = vpack.c.bf16 %v2095_v21, %v2093_v0  ;;  %1494 = vst.msk [vmem:[%s2698_s25 + $0x38] sm:$0xf] %vm1479_vm9, %v1938_v6 }
 0x1ba   : > { %v1939_v16 = vpack.c.bf16 %v2095_v21, %v2095_v21  ;;  %v1421_v43 = vpack.c.bf16 %v2096_v25, %v2094_v20  ;;  %v1937_v57 = vpack.c.bf16 %v2096_v25, %v2096_v25  ;;  %v1586_v14 = vsel %vm997_vm7, %v1561_v7, 0.0 }
 0x1bb   : > { %v1532_v24 = vadd.f32 %v1531_v60, %v1530_v47  ;;  %v1585_v28 = vadd.f32 %v1584_v23, %v1583_v22  ;;  %1492 = vst.msk [vmem:[%s2698_s25 + $0x30] sm:$0xf] %vm1479_vm9, %v1936_v26  ;;  %v1510_v30 = vunpack.c.l.bf16 %v1422_v27  ;;  %v1588_v36 = vsel %vm997_vm7, %v1562_v15, 0.0 }
 0x1bc   : > { %1495 = vst.msk [vmem:[%s2698_s25 + $0x3c] sm:$0xf] %vm1479_vm9, %v1939_v16  ;;  %1493 = vst.msk [vmem:[%s2698_s25 + $0x34] sm:$0xf] %vm1479_vm9, %v1937_v57  ;;  %v1508_v32 = vunpack.c.l.bf16 %v1421_v43  ;;  %v1509_v33 = vunpack.c.h.bf16 %v1421_v43  ;;  %v1511_v37 = vunpack.c.h.bf16 %v1422_v27 }
 0x1bd   : > { %v1587_v31 = vadd.f32 %v1586_v14, %v1585_v28  ;;  %v1534_v35 = vadd.f32 %v1533_v29, %v1532_v24  ;;  %v1565_v59 = vmul.f32 %v1510_v30, %v1510_v30  ;;  %v1539_v49 = vsel %vm997_vm7, %v1510_v30, 0.0 }
 0x1be   : > { %v1535_v38 = vsel %vm997_vm7, %v1508_v32, 0.0  ;;  %v1563_v39 = vmul.f32 %v1508_v32, %v1508_v32  ;;  %v1564_v40 = vmul.f32 %v1509_v33, %v1509_v33  ;;  %v1537_v44 = vsel %vm997_vm7, %v1509_v33, 0.0 }
 0x1bf   : > { %v1536_v41 = vadd.f32 %v1535_v38, %v1534_v35  ;;  %v1589_v42 = vadd.f32 %v1588_v36, %v1587_v31  ;;  %v1566_v51 = vmul.f32 %v1511_v37, %v1511_v37  ;;  %v1541_v55 = vsel %vm997_vm7, %v1511_v37, 0.0 }
 0x1c0   : > { %v1590_v45 = vsel %vm997_vm7, %v1563_v39, 0.0  ;;  %v1592_v52 = vsel %vm997_vm7, %v1564_v40, 0.0  ;;  %v1594_v56 = vsel %vm997_vm7, %v1565_v59, 0.0 }
 0x1c1   : > { %v1538_v46 = vadd.f32 %v1537_v44, %v1536_v41  ;;  %v1591_v48 = vadd.f32 %v1590_v45, %v1589_v42  ;;  %v1596_v11 = vsel %vm997_vm7, %v1566_v51, 0.0 }
 0x1c3   : > { %v1540_v53 = vadd.f32 %v1539_v49, %v1538_v46  ;;  %v1593_v54 = vadd.f32 %v1592_v52, %v1591_v48 }
 0x1c5   : > { %v1542_v58 = vadd.f32 %v1541_v55, %v1540_v53  ;;  %v1595_v62 = vadd.f32 %v1594_v56, %v1593_v54 }
 0x1c7   : > { %v1543_v12 = vrot.slane %v1542_v58, 4  ;;  %v1597_v63 = vadd.f32 %v1596_v11, %v1595_v62 }
 0x1c9   : > { %v1544_v2 = vadd.f32 %v1543_v12, %v1542_v58  ;;  %v1598_v3 = vrot.slane %v1597_v63, 4 }
 0x1cb   : > { %v1545_v4 = vrot.slane %v1544_v2, 2  ;;  %v1599_v1 = vadd.f32 %v1598_v3, %v1597_v63 }
 0x1cd   : > { %v1546_v5 = vadd.f32 %v1545_v4, %v1544_v2  ;;  %v1600_v34 = vrot.slane %v1599_v1, 2 }
 0x1cf   : > { %v1547_v61 = vrot.slane %v1546_v5, 1  ;;  %v1601_v60 = vadd.f32 %v1600_v34, %v1599_v1 }
 0x1d1   : > { %v1548_v50 = vadd.f32 %v1547_v61, %v1546_v5  ;;  %v1602_v8 = vrot.slane %v1601_v60, 1 }
 0x1d3   : > { %1550 = vst.msk [vmem:[%s503_s24] sm:$0x1] %vm1549_vm10, %v1548_v50  ;;  %v1603_v10 = vadd.f32 %v1602_v8, %v1601_v60 }
 0x1d5   : > { %1604 = vst.msk [vmem:[%s510_s13] sm:$0x1] %vm1549_vm10, %v1603_v10 }
 0x1d6 PF: > { %s19_s9 = sadd.s32 1, %s2203_s9   ;;  %s2801_s27 = smov %s2195_s29 }
 0x1d7   : > { %p16_p0 = scmp.ge.s32.totalorder %s19_s9, 6   ;;  %s2802_s28 = smov %s2199_s30 }
 0x1d8   : > { %s2803_s29 = smov %s2806_s10  ;;  %s2804_s30 = smov %s2810_s11 }
 0x1d9   :  { %18 = sbr.rel (!%p16_p0) target bundleno = 3 (0x3), region = 106 }

</bundles_post_ra>
